<compile_context>
chip_gen: v7x
topology: tpu7x:2x2x1
jax: 0.10.0
libtpu: 0.0.40
codegen_flags: <defaults>
</compile_context>

<pallas_src>
import functools

import jax
import jax.numpy as jnp
from jax.experimental import pallas as pl
from jax.experimental.pallas import tpu as pltpu


# ------------------------------ small helpers ------------------------------ #

def _round_up(x, m):
    return ((x + m - 1) // m) * m


def _num_tensorcores():
    """Heuristic TC count: 2 on v7x, 1 on v5e/v6e (and 1 on CPU/interpret)."""
    try:
        kind = jax.devices()[0].device_kind.lower()
    except Exception:
        return 1
    return 2 if ("v7" in kind or "tpu7" in kind) else 1


# ----------------- precomputed (host/XLA side) weight folding --------------- #

def _build_fused_qkv(w_qkv_t, b_qkv, C, nh, scale, lanes_per_seg):
    """Fuse Wq/Wk/Wv into one (C, 3*Lp) weight, Lp = round_up(nh*C, 128).

    Within each Lp-wide segment, lane b = (i*nh + j)*hd + d (pad lanes zero):
      segment 0 -> q replicated per (head_i, head_j) pair, attention scale folded in
      segment 1 -> k tiled nh times
      segment 2 -> v tiled nh times
    """
    hd = C // nh
    L = nh * C
    Lp = lanes_per_seg
    Wq, Wk, Wv = w_qkv_t[:, :C], w_qkv_t[:, C:2 * C], w_qkv_t[:, 2 * C:]
    bq, bk, bv = b_qkv[:C], b_qkv[C:2 * C], b_qkv[2 * C:]

    Wq_rep = jnp.broadcast_to((Wq * scale).reshape(C, nh, 1, hd),
                              (C, nh, nh, hd)).reshape(C, L)
    bq_rep = jnp.broadcast_to((bq * scale).reshape(nh, 1, hd),
                              (nh, nh, hd)).reshape(L)
    Wk_til = jnp.tile(Wk, (1, nh))
    bk_til = jnp.tile(bk, nh)
    Wv_til = jnp.tile(Wv, (1, nh))
    bv_til = jnp.tile(bv, nh)

    def pad_cols(a):
        return jnp.pad(a, ((0, 0), (0, Lp - a.shape[1])))

    def pad_vec(v):
        return jnp.pad(v, (0, Lp - v.shape[0]))

    w_fused = jnp.concatenate(
        [pad_cols(Wq_rep), pad_cols(Wk_til), pad_cols(Wv_til)], axis=1)   # (C, 3*Lp)
    b_fused = jnp.concatenate(
        [pad_vec(bq_rep), pad_vec(bk_til), pad_vec(bv_til)]).reshape(1, 3 * Lp)
    return w_fused, b_fused.astype(jnp.float32)


def _build_mix_matrices(C, nh, lanes_per_seg):
    """Constant 0/1 matrices so the MXU does all segmented sums / broadcasts.

    seg_sum  (Lp, P): sums q*k products over d within each (i,j) head pair.
    grp_sum  (P, P) : per-lane softmax denominator (sum over j within head i).
    seg_bcast(P, Lp): broadcasts attn prob p[i,j] over the hd lanes of pair (i,j).
    out_mix  (Lp, C): sums over j AND produces the PyTorch c = d*nh + i interleave.
    Pad lanes (b >= nh*C) map to zero rows/columns everywhere.
    """
    hd = C // nh
    L = nh * C
    Lp = lanes_per_seg
    P = nh * nh
    b_idx = jnp.arange(Lp)
    real = b_idx < L
    pair = jnp.where(real, b_idx // hd, -1)          # -1 => pad lane, matches nothing
    i_b = pair // nh
    d_b = b_idx % hd
    p_idx = jnp.arange(P)
    c_idx = jnp.arange(C)
    i_c = c_idx % nh                                  # PyTorch interleave: c = d*nh + i
    d_c = c_idx // nh

    seg_sum = (pair[:, None] == p_idx[None, :]).astype(jnp.float32)        # (Lp, P)
    grp_sum = ((p_idx[:, None] // nh) == (p_idx[None, :] // nh)).astype(jnp.float32)
    seg_bcast = (p_idx[:, None] == pair[None, :]).astype(jnp.float32)      # (P, Lp)
    out_mix = (real[:, None] & (i_b[:, None] == i_c[None, :]) &
               (d_b[:, None] == d_c[None, :])).astype(jnp.float32)         # (Lp, C)
    return seg_sum, grp_sum, seg_bcast, out_mix


# ------------------------------ Pallas kernel ------------------------------ #

def _per_token_head_attn_kernel(x_ref, w_ref, b_ref, ssum_ref, gsum_ref, sbc_ref,
                                omix_ref, o_ref, *, lanes_per_seg, mxu_dtype):
    """Per-token fused QKV + head-vs-head attention for a (tm, C) token tile."""
    Lp = lanes_per_seg

    x = x_ref[...]                                   # (tm, C), compute dtype
    # One fused MXU pass: [q_rep | k_til | v_til]; attention scale folded into q.
    qkv = jnp.dot(x, w_ref[...], preferred_element_type=jnp.float32) + b_ref[...]
    q_rep = qkv[:, :Lp]                              # lane-aligned slices (Lp % 128 == 0)
    k_til = qkv[:, Lp:2 * Lp]
    v_til = qkv[:, 2 * Lp:]

    # logits[t, i*nh+j] = sum_d scale*q_i[d]*k_j[d]: VPU multiply + MXU segment sum.
    logits = jnp.dot((q_rep * k_til).astype(mxu_dtype), ssum_ref[...],
                     preferred_element_type=jnp.float32)                 # (tm, P)

    # Full-width softmax over j within each head-i group: one row max (same shift
    # for every group -> identical result), one exp, one tiny (P,P) group-sum
    # matmul for per-lane denominators, one EXACT reciprocal (the approx=True
    # reciprocal of v2 was the source of the 5.9e-3 error).
    m = jnp.max(logits, axis=-1, keepdims=True)
    e = jnp.exp(logits - m)
    den = jnp.dot(e.astype(mxu_dtype), gsum_ref[...],
                  preferred_element_type=jnp.float32)
    den = jnp.maximum(den, 1e-30)                    # guard against all-underflow groups
    p = e * pl.reciprocal(den, approx=False)         # (tm, P)

    # out[t, d*nh+i] = sum_j p[t,i,j] * v[t, j*hd+d]: broadcast p over hd lanes via
    # the MXU, full-width VPU multiply, then one MXU pass that simultaneously sums
    # over j and produces the PyTorch channel interleave.
    p_b = jnp.dot(p.astype(mxu_dtype), sbc_ref[...],
                  preferred_element_type=jnp.float32)                    # (tm, Lp)
    out = jnp.dot((p_b * v_til).astype(mxu_dtype), omix_ref[...],
                  preferred_element_type=jnp.float32)                    # (tm, C)
    o_ref[...] = out.astype(o_ref.dtype)


def _attend_tokens(tokens, w_fused, b_fused, mix, num_heads, *,
                   compute_dtype, tm_target=1024):
    T, C = tokens.shape
    seg_sum, grp_sum, seg_bcast, out_mix = mix
    Lp = seg_sum.shape[0]
    P = num_heads * num_heads

    # Generation-aware token tile: one big step on 1-TC chips (v5e/v6e); on v7x keep
    # >= 2 steps per TensorCore so the per-core in/out DMA overlaps with compute.
    num_tc = _num_tensorcores()
    if num_tc > 1:
        tm = min(tm_target, max(8, _round_up(pl.cdiv(T, 2 * num_tc), 8)))
    else:
        tm = min(tm_target, _round_up(T, 8))
    tm = max(8, _round_up(tm, 8))
    Tp = _round_up(T, tm)

    tokens_p = tokens.astype(compute_dtype)          # halves the HBM read when bf16
    if Tp != T:
        tokens_p = jnp.pad(tokens_p, ((0, Tp - T), (0, 0)))

    csize = jnp.dtype(compute_dtype).itemsize
    osize = tokens.dtype.itemsize
    flops = 2 * Tp * (C * 3 * Lp + Lp * P + P * P + P * Lp + Lp * C) + 4 * Tp * Lp
    bytes_accessed = (Tp * C * (csize + osize)
                      + (C * 3 * Lp + Lp * P + P * P + P * Lp + Lp * C) * csize
                      + 3 * Lp * 4)
    cost = pl.CostEstimate(flops=int(flops), transcendentals=int(Tp * P),
                           bytes_accessed=int(bytes_accessed))

    # Explicit VMEM budget: the nh-inflated fused weight becomes a real hazard on
    # v7x (64 MiB VMEM) at realistic Swin widths; derive the limit from the shapes.
    vmem_demand = (2 * tm * C * (csize + osize)                     # double-buffered in/out
                   + 2 * (C * 3 * Lp + 3 * Lp) * csize              # fused weight + bias
                   + 2 * (Lp * P + P * P + P * Lp + Lp * C) * csize  # mixing constants
                   + 4 * tm * 3 * Lp * 4)                           # f32 qkv/softmax temps
    vmem_limit = int(min(max(2 * vmem_demand, 16 * 1024 * 1024), 64 * 1024 * 1024))

    out = pl.pallas_call(
        functools.partial(_per_token_head_attn_kernel,
                          lanes_per_seg=Lp, mxu_dtype=compute_dtype),
        out_shape=jax.ShapeDtypeStruct((Tp, C), tokens.dtype),
        grid=(Tp // tm,),
        in_specs=[
            pl.BlockSpec((tm, C), lambda i: (i, 0)),        # token tile
            pl.BlockSpec((C, 3 * Lp), lambda i: (0, 0)),    # fused/expanded qkv weight
            pl.BlockSpec((1, 3 * Lp), lambda i: (0, 0)),    # fused qkv bias (f32)
            pl.BlockSpec((Lp, P), lambda i: (0, 0)),        # segment-sum matrix
            pl.BlockSpec((P, P), lambda i: (0, 0)),         # softmax group-sum matrix
            pl.BlockSpec((P, Lp), lambda i: (0, 0)),        # segment-broadcast matrix
            pl.BlockSpec((Lp, C), lambda i: (0, 0)),        # j-sum + channel interleave
        ],
        out_specs=pl.BlockSpec((tm, C), lambda i: (i, 0)),
        compiler_params=pltpu.CompilerParams(
            dimension_semantics=("parallel",),
            vmem_limit_bytes=vmem_limit),
        cost_estimate=cost,
    )(tokens_p,
      w_fused.astype(compute_dtype), b_fused.astype(jnp.float32),
      seg_sum.astype(compute_dtype), grp_sum.astype(compute_dtype),
      seg_bcast.astype(compute_dtype), out_mix.astype(compute_dtype))
    return out if Tp == T else out[:T]


# ------------------------------- module port ------------------------------- #

class WindowAttention3DPallas:
    def __init__(self, dim, window_size, num_heads, qkv_bias=True, key=None,
                 compute_dtype=jnp.bfloat16):
        self.dim = dim
        self.window_size = window_size
        self.num_heads = num_heads
        self.compute_dtype = compute_dtype
        head_dim = dim // num_heads
        self.scale = head_dim ** (-0.5)
        if key is None:
            key = jax.random.PRNGKey(0)
        k1, k2 = jax.random.split(key)
        # nn.Linear(dim, 3*dim): weight (3C, C), forward is x @ W.T + b.
        bound = 1.0 / (dim ** 0.5)
        w_qkv = jax.random.uniform(k1, (3 * dim, dim), jnp.float32, -bound, bound)
        if qkv_bias:
            b_qkv = jax.random.uniform(k2, (3 * dim,), jnp.float32, -bound, bound)
        else:
            b_qkv = jnp.zeros((3 * dim,), jnp.float32)
        self.w_qkv_t = w_qkv.T          # (C, 3C)
        self.b_qkv = b_qkv              # (3C,)
        # Pad each q/k/v lane segment to a multiple of 128 so in-kernel column
        # slices stay vreg-aligned for any (dim, num_heads).
        self.lanes_per_seg = _round_up(num_heads * dim, 128)
        self.w_fused, self.b_fused = _build_fused_qkv(
            self.w_qkv_t, self.b_qkv, dim, num_heads, self.scale, self.lanes_per_seg)
        self.mix = _build_mix_matrices(dim, num_heads, self.lanes_per_seg)
        # NOTE: self.proj / attn_drop(p=0) / proj_drop / DropKey(False) are never
        # applied in the reference forward -> omitted.

    def __call__(self, x):
        B, D, H, W, C = x.shape
        # Window partition / spatial pad / window reverse / crop removed: the
        # reference attention is purely per-token (softmax over heads), so the
        # windowing only permutes tokens and padded tokens are cropped again —
        # a mathematical no-op that cost several HBM round trips.
        tokens = x.reshape(-1, C)
        out = _attend_tokens(tokens, self.w_fused, self.b_fused, self.mix,
                             self.num_heads, compute_dtype=self.compute_dtype)
        return out.reshape(B, D, H, W, C)


# --------------------------- pure-JAX reference ---------------------------- #
# Faithful port of the PyTorch forward, INCLUDING the window partition / pad /
# reverse / crop path, to prove the no-op removal above is exact.

def window_partition(x, window_size):
    B, D, H, W, C = x.shape
    wD, wH, wW = window_size
    wD, wH, wW = min(wD, D), min(wH, H), min(wW, W)
    pad_d = (wD - D % wD) % wD
    pad_h = (wH - H % wH) % wH
    pad_w = (wW - W % wW) % wW
    x = jnp.pad(x, ((0, 0), (0, pad_d), (0, pad_h), (0, pad_w), (0, 0)))
    Dp, Hp, Wp = D + pad_d, H + pad_h, W + pad_w
    x = x.reshape(B, Dp // wD, wD, Hp // wH, wH, Wp // wW, wW, C)
    x = jnp.transpose(x, (0, 1, 3, 5, 2, 4, 6, 7))
    return x.reshape(-1, wD, wH, wW, C)


def window_reverse(windows, window_size, B, D, H, W):
    wD, wH, wW = window_size
    x = windows.reshape(B, D // wD, H // wH, W // wW, wD, wH, wW, -1)
    x = jnp.transpose(x, (0, 1, 4, 2, 5, 3, 6, 7))
    return x.reshape(B, D, H, W, -1)


def reference_forward(x, w_qkv_t, b_qkv, window_size, num_heads):
    B, oD, oH, oW, C = x.shape
    wD, wH, wW = window_size
    pad_d = (wD - oD % wD) % wD
    pad_h = (wH - oH % wH) % wH
    pad_w = (wW - oW % wW) % wW
    if pad_d or pad_h or pad_w:
        x = jnp.pad(x, ((0, 0), (0, pad_d), (0, pad_h), (0, pad_w), (0, 0)))
    _, D, H, W, _ = x.shape
    windows = window_partition(x, (wD, wH, wW)).reshape(-1, wD * wH * wW, C)
    qkv = windows @ w_qkv_t + b_qkv                            # (nW, N, 3C)
    qkv = qkv.reshape(-1, 3, num_heads, C // num_heads)
    qkv = jnp.transpose(qkv, (1, 0, 2, 3))
    q, k, v = qkv[0], qkv[1], qkv[2]
    scale = (C // num_heads) ** (-0.5)
    attn = jnp.einsum('tid,tjd->tij', q, k) * scale
    attn = jax.nn.softmax(attn, axis=-1)
    out = jnp.einsum('tij,tjd->tid', attn, v)
    out = jnp.transpose(out, (0, 2, 1)).reshape(-1, wD, wH, wW, C)
    out = window_reverse(out, (wD, wH, wW), B, D, H, W)
    return out[:, :oD, :oH, :oW, :]


# ----------------------------------- main ----------------------------------- #

if __name__ == "__main__":
    key = jax.random.PRNGKey(0)
    kx, kp = jax.random.split(key)

    B, D, H, W, C = 2, 4, 6, 5, 32        # W=5 exercises the reference padding path
    num_heads = 4
    window_size = (2, 2, 2)

    x = jax.random.normal(kx, (B, D, H, W, C), dtype=jnp.float32)

    # Same key -> identical weights; only the MXU operand dtype differs.
    mod_bf16 = WindowAttention3DPallas(C, window_size, num_heads, key=kp,
                                       compute_dtype=jnp.bfloat16)
    mod_f32 = WindowAttention3DPallas(C, window_size, num_heads, key=kp,
                                      compute_dtype=jnp.float32)

    out_bf16 = jax.block_until_ready(mod_bf16(x))
    out_f32 = jax.block_until_ready(mod_f32(x))

    ref = reference_forward(x, mod_f32.w_qkv_t, mod_f32.b_qkv, window_size, num_heads)
    assert out_bf16.shape == (B, D, H, W, C), out_bf16.shape
    assert out_f32.shape == (B, D, H, W, C), out_f32.shape

    # f32 compute path is algorithmically exact (observed ~1e-5): strict check.
    err_f32 = float(jnp.max(jnp.abs(out_f32 - ref)))
    assert err_f32 < 1e-3, f"f32 max abs err {err_f32}"

    # bf16 MXU-operand path: ~2^-8 operand rounding through two chained matmuls on
    # O(1) activations gives worst-case ~3e-2 abs error; loose max bound + tighter
    # mean bound to catch real bugs (which show up at O(0.5)).
    err_bf16 = float(jnp.max(jnp.abs(out_bf16 - ref)))
    err_bf16_mean = float(jnp.mean(jnp.abs(out_bf16 - ref)))
    assert err_bf16 < 1e-1, f"bf16 max abs err {err_bf16}"
    assert err_bf16_mean < 2e-2, f"bf16 mean abs err {err_bf16_mean}"

    print("KERNEL_OK")
</pallas_src>

<mosaic_0001>
module attributes {stable_mosaic.version = 11 : i64} {
  func.func @_per_token_head_attn_kernel(%arg0: i32, %arg1: memref<240x32xbf16, #tpu.memory_space<vmem>>, %arg2: memref<32x384xbf16, #tpu.memory_space<vmem>>, %arg3: memref<1x384xf32, #tpu.memory_space<vmem>>, %arg4: memref<128x16xbf16, #tpu.memory_space<vmem>>, %arg5: memref<16x16xbf16, #tpu.memory_space<vmem>>, %arg6: memref<16x128xbf16, #tpu.memory_space<vmem>>, %arg7: memref<128x32xbf16, #tpu.memory_space<vmem>>, %arg8: memref<240x32xf32, #tpu.memory_space<vmem>>) attributes {dimension_semantics = [#tpu.dimension_semantics<parallel>], iteration_bounds = array<i64: 1>, scalar_prefetch = 0 : i64, scratch_operands = 0 : i64, tpu.core_type = #tpu.core_type<tc>, window_params = [{transform_indices = @transform_0, window_bounds = array<i64: 240, 32>}, {pipeline_mode = #tpu.pipeline_mode<synchronous>, transform_indices = @transform_1, window_bounds = array<i64: 32, 384>}, {pipeline_mode = #tpu.pipeline_mode<synchronous>, transform_indices = @transform_2, window_bounds = array<i64: 1, 384>}, {pipeline_mode = #tpu.pipeline_mode<synchronous>, transform_indices = @transform_3, window_bounds = array<i64: 128, 16>}, {pipeline_mode = #tpu.pipeline_mode<synchronous>, transform_indices = @transform_4, window_bounds = array<i64: 16, 16>}, {pipeline_mode = #tpu.pipeline_mode<synchronous>, transform_indices = @transform_5, window_bounds = array<i64: 16, 128>}, {pipeline_mode = #tpu.pipeline_mode<synchronous>, transform_indices = @transform_6, window_bounds = array<i64: 128, 32>}, {transform_indices = @transform_7, window_bounds = array<i64: 240, 32>}]} {
    %c0 = arith.constant 0 : index
    %c0_0 = arith.constant 0 : index
    %0 = vector.load %arg1[%c0, %c0_0] : memref<240x32xbf16, #tpu.memory_space<vmem>>, vector<240x32xbf16>
    %c0_1 = arith.constant 0 : index
    %c0_2 = arith.constant 0 : index
    %1 = vector.load %arg2[%c0_1, %c0_2] : memref<32x384xbf16, #tpu.memory_space<vmem>>, vector<32x384xbf16>
    %cst = arith.constant dense<0.000000e+00> : vector<240x384xf32>
    %2 = tpu.matmul %0, %1, %cst {dimension_numbers = #tpu.dot_dimension_numbers<[1], [0], [0], [1], [0, 0, 1, 1], [], []>} : vector<240x32xbf16>, vector<32x384xbf16>, vector<240x384xf32> -> vector<240x384xf32>
    %c0_3 = arith.constant 0 : index
    %c0_4 = arith.constant 0 : index
    %3 = vector.load %arg3[%c0_3, %c0_4] : memref<1x384xf32, #tpu.memory_space<vmem>>, vector<1x384xf32>
    %4 = vector.broadcast %3 : vector<1x384xf32> to vector<240x384xf32>
    %5 = arith.addf %2, %4 : vector<240x384xf32>
    %6 = vector.extract_strided_slice %5 {offsets = [0, 0], sizes = [240, 128], strides = [1, 1]} : vector<240x384xf32> to vector<240x128xf32>
    %7 = vector.extract_strided_slice %5 {offsets = [0, 128], sizes = [240, 128], strides = [1, 1]} : vector<240x384xf32> to vector<240x128xf32>
    %8 = vector.extract_strided_slice %5 {offsets = [0, 256], sizes = [240, 128], strides = [1, 1]} : vector<240x384xf32> to vector<240x128xf32>
    %9 = arith.mulf %6, %7 : vector<240x128xf32>
    %10 = arith.truncf %9 : vector<240x128xf32> to vector<240x128xbf16>
    %c0_5 = arith.constant 0 : index
    %c0_6 = arith.constant 0 : index
    %11 = vector.load %arg4[%c0_5, %c0_6] : memref<128x16xbf16, #tpu.memory_space<vmem>>, vector<128x16xbf16>
    %cst_7 = arith.constant dense<0.000000e+00> : vector<240x16xf32>
    %12 = tpu.matmul %10, %11, %cst_7 {dimension_numbers = #tpu.dot_dimension_numbers<[1], [0], [0], [1], [0, 0, 1, 1], [], []>} : vector<240x128xbf16>, vector<128x16xbf16>, vector<240x16xf32> -> vector<240x16xf32>
    %cst_8 = arith.constant dense<0xFF800000> : vector<240xf32>
    %13 = vector.multi_reduction <maximumf>, %12, %cst_8 [1] : vector<240x16xf32> to vector<240xf32>
    %14 = vector.shape_cast %13 : vector<240xf32> to vector<240x1xf32>
    %15 = vector.broadcast %14 : vector<240x1xf32> to vector<240x16xf32>
    %16 = arith.subf %12, %15 : vector<240x16xf32>
    %17 = math.exp %16 : vector<240x16xf32>
    %18 = arith.truncf %17 : vector<240x16xf32> to vector<240x16xbf16>
    %c0_9 = arith.constant 0 : index
    %c0_10 = arith.constant 0 : index
    %19 = vector.load %arg5[%c0_9, %c0_10] : memref<16x16xbf16, #tpu.memory_space<vmem>>, vector<16x16xbf16>
    %cst_11 = arith.constant dense<0.000000e+00> : vector<240x16xf32>
    %20 = tpu.matmul %18, %19, %cst_11 {dimension_numbers = #tpu.dot_dimension_numbers<[1], [0], [0], [1], [0, 0, 1, 1], [], []>} : vector<240x16xbf16>, vector<16x16xbf16>, vector<240x16xf32> -> vector<240x16xf32>
    %cst_12 = arith.constant 1.000000e-30 : f32
    %21 = vector.broadcast %cst_12 : f32 to vector<240x16xf32>
    %22 = arith.maximumf %20, %21 : vector<240x16xf32>
    %23 = tpu.reciprocal %22 : vector<240x16xf32> -> vector<240x16xf32>
    %24 = arith.mulf %17, %23 : vector<240x16xf32>
    %25 = arith.truncf %24 : vector<240x16xf32> to vector<240x16xbf16>
    %c0_13 = arith.constant 0 : index
    %c0_14 = arith.constant 0 : index
    %26 = vector.load %arg6[%c0_13, %c0_14] : memref<16x128xbf16, #tpu.memory_space<vmem>>, vector<16x128xbf16>
    %cst_15 = arith.constant dense<0.000000e+00> : vector<240x128xf32>
    %27 = tpu.matmul %25, %26, %cst_15 {dimension_numbers = #tpu.dot_dimension_numbers<[1], [0], [0], [1], [0, 0, 1, 1], [], []>} : vector<240x16xbf16>, vector<16x128xbf16>, vector<240x128xf32> -> vector<240x128xf32>
    %28 = arith.mulf %27, %8 : vector<240x128xf32>
    %29 = arith.truncf %28 : vector<240x128xf32> to vector<240x128xbf16>
    %c0_16 = arith.constant 0 : index
    %c0_17 = arith.constant 0 : index
    %30 = vector.load %arg7[%c0_16, %c0_17] : memref<128x32xbf16, #tpu.memory_space<vmem>>, vector<128x32xbf16>
    %cst_18 = arith.constant dense<0.000000e+00> : vector<240x32xf32>
    %31 = tpu.matmul %29, %30, %cst_18 {dimension_numbers = #tpu.dot_dimension_numbers<[1], [0], [0], [1], [0, 0, 1, 1], [], []>} : vector<240x128xbf16>, vector<128x32xbf16>, vector<240x32xf32> -> vector<240x32xf32>
    %c0_19 = arith.constant 0 : index
    %c0_20 = arith.constant 0 : index
    %32 = vector.load %arg8[%c0_19, %c0_20] : memref<240x32xf32, #tpu.memory_space<vmem>>, vector<240x32xf32>
    tpu.vector_store %arg8[%c0_19, %c0_20], %31 {strides = array<i32>} : memref<240x32xf32, #tpu.memory_space<vmem>>, vector<240x32xf32>,
    return
  }
  func.func @transform_0(%arg0: i32) -> (i32, i32) {
    %c0_i32 = arith.constant 0 : i32
    %c0_i32_0 = arith.constant 0 : i32
    return %arg0, %c0_i32 : i32, i32
  }
  func.func @transform_1(%arg0: i32) -> (i32, i32) {
    %c0_i32 = arith.constant 0 : i32
    %c0_i32_0 = arith.constant 0 : i32
    %c0_i32_1 = arith.constant 0 : i32
    return %c0_i32, %c0_i32_0 : i32, i32
  }
  func.func @transform_2(%arg0: i32) -> (i32, i32) {
    %c0_i32 = arith.constant 0 : i32
    %c0_i32_0 = arith.constant 0 : i32
    %c0_i32_1 = arith.constant 0 : i32
    return %c0_i32, %c0_i32_0 : i32, i32
  }
  func.func @transform_3(%arg0: i32) -> (i32, i32) {
    %c0_i32 = arith.constant 0 : i32
    %c0_i32_0 = arith.constant 0 : i32
    %c0_i32_1 = arith.constant 0 : i32
    return %c0_i32, %c0_i32_0 : i32, i32
  }
  func.func @transform_4(%arg0: i32) -> (i32, i32) {
    %c0_i32 = arith.constant 0 : i32
    %c0_i32_0 = arith.constant 0 : i32
    %c0_i32_1 = arith.constant 0 : i32
    return %c0_i32, %c0_i32_0 : i32, i32
  }
  func.func @transform_5(%arg0: i32) -> (i32, i32) {
    %c0_i32 = arith.constant 0 : i32
    %c0_i32_0 = arith.constant 0 : i32
    %c0_i32_1 = arith.constant 0 : i32
    return %c0_i32, %c0_i32_0 : i32, i32
  }
  func.func @transform_6(%arg0: i32) -> (i32, i32) {
    %c0_i32 = arith.constant 0 : i32
    %c0_i32_0 = arith.constant 0 : i32
    %c0_i32_1 = arith.constant 0 : i32
    return %c0_i32, %c0_i32_0 : i32, i32
  }
  func.func @transform_7(%arg0: i32) -> (i32, i32) {
    %c0_i32 = arith.constant 0 : i32
    %c0_i32_0 = arith.constant 0 : i32
    return %arg0, %c0_i32 : i32, i32
  }
}

</mosaic_0001>

<bundles_post_ra>
// kernel: tpu_custom_call.1
= control target key start
LH: loop header
LB: loop body
LE: loop exit
PB: predicated region body
PF: predicated region fallthrough
CT: control target
= control target key end

     0   :  { %v2541_v1 = vmov 0   ;;  %v3601_v2 = vmov 0.0   ;;  %vm189_vm0 = vcmask 261120   ;;  %vm2543_vm1 = vmmov 0   ;;  %s3593_s1 = inlined_call_operand.vmem [shape: bf16[32,384], index: 1, kind: input, shape index: {}]   ;;  %s3594_s0 = inlined_call_operand.vmem [shape: bf16[240,32], index: 0, kind: input, shape index: {}]   ;;  %s3595_s3 = inlined_call_operand.vmem [shape: bf16[128,16], index: 3, kind: input, shape index: {}]   ;;  %s3596_s2 = inlined_call_operand.vmem [shape: f32[1,384], index: 2, kind: input, shape index: {}]   ;;  %s3597_s4 = inlined_call_operand.vmem [shape: bf16[16,16], index: 4, kind: input, shape index: {}]   ;;  %s3598_s5 = inlined_call_operand.vmem [shape: bf16[16,128], index: 5, kind: input, shape index: {}]   ;;  %s3599_s6 = inlined_call_operand.vmem [shape: bf16[128,32], index: 6, kind: input, shape index: {}]   ;;  %s3600_s7 = inlined_call_operand.vmem [shape: f32[240,32], index: 7, kind: output, shape index: {}]  }
   0x1   :  { %v2379_v0 = vld [vmem:[%s3593_s1 + $0x4] ss:$12 sps:$4 sm:$0xff]   ;;  %267 = vmatprep.mubr.bf16.mxu0 %v2541_v1  ;;  %2036 = vmatprep.subr.bf16.mxu1 %v3601_v2  ;;  %v2381_v3 = vld [vmem:[%s3593_s1] ss:$12 sps:$4 sm:$0xff]   ;;  %v2382_v4 = vld [vmem:[%s3593_s1 + $0x1c] ss:$12 sps:$4 sm:$0xff]   ;;  %v67_v29 = vlaneseq }
   0x2   :  { %235 = vmatprep.subr.bf16.mxu0 %v2379_v0  ;;  %v2384_v5 = vld [vmem:[%s3593_s1 + $0x18] ss:$12 sps:$4 sm:$0xff]   ;;  %v2610_v7 = vld [vmem:[%s3594_s0 + $0x8] sm:$0xff]   ;;  %v2625_v10 = vld [vmem:[%s3594_s0 + $0x10] sm:$0xff]   ;;  %2040 = vmatprep.mubr.msk.bf16.mxu1 %vm2543_vm1, %v3601_v2  ;;  %vm833_vm2 = vcmask 130048  }
   0x3   :  { %236 = vmatpush1.bf16.msra.mxu0 %v2381_v3  ;;  %v2601_v6 = vld [vmem:[%s3594_s0] sm:$0xff]   ;;  %v2401_v9 = vld [vmem:[%s3595_s3 + $0x8] sm:$0xff]   ;;  %v2402_v11 = vld [vmem:[%s3595_s3 + $0x10] sm:$0xff]   ;;  %v2754_v30 = vshrl.u32 %v67_v29, 7 }
   0x4   :  { %237 = vmatprep.subr.bf16.mxu0 %v2382_v4  ;;  %v2398_v8 = vld [vmem:[%s3595_s3] sm:$0xff]   ;;  %v2403_v12 = vld [vmem:[%s3595_s3 + $0x18] sm:$0xff]   ;;  %v2405_v15 = vld [vmem:[%s3595_s3 + $0x28] sm:$0xff]  }
   0x5   :  { %v2641_v13 = vld [vmem:[%s3594_s0 + $0x18] sm:$0xff]   ;;  %v2404_v14 = vld [vmem:[%s3595_s3 + $0x20] sm:$0xff]   ;;  %v2406_v17 = vld [vmem:[%s3595_s3 + $0x30] sm:$0xff]   ;;  %v69_v31 = vsub.s32 0, %v2754_v30  ;;  %v73_v33 = vsub.s32 1, %v2754_v30 }
   0x6   :  { %v2657_v16 = vld [vmem:[%s3594_s0 + $0x20] sm:$0xff]   ;;  %v2407_v18 = vld [vmem:[%s3595_s3 + $0x38] sm:$0xff]   ;;  %v2673_v19 = vld [vmem:[%s3594_s0 + $0x28] sm:$0xff]  }
   0x7   :  { %238 = vmatpush1.bf16.msra.mxu0 %v2384_v5  ;;  %v2682_v20 = vld [vmem:[%s3594_s0 + $0x30] sm:$0xff]   ;;  %v2690_v21 = vld [vmem:[%s3594_s0 + $0x38] sm:$0xff]   ;;  %v2698_v22 = vld [vmem:[%s3594_s0 + $0x40] sm:$0xff]  }
   0x8   :  { %2100 = vmatprep.subr.bf16.mxu0 %v3601_v2  ;;  %v2706_v23 = vld [vmem:[%s3594_s0 + $0x48] sm:$0xff]   ;;  %v2714_v24 = vld [vmem:[%s3594_s0 + $0x50] sm:$0xff]   ;;  %v2722_v25 = vld [vmem:[%s3594_s0 + $0x58] sm:$0xff]  }
   0x9   :  { %v2730_v26 = vld [vmem:[%s3594_s0 + $0x60] sm:$0xff]   ;;  %v2740_v27 = vld [vmem:[%s3594_s0 + $0x68] sm:$0xff]   ;;  %v2748_v28 = vld [vmem:[%s3594_s0 + $0x70] sm:$0xff]  }
   0xa   :  { %1863 = vmatmul.mubr.msk.bf16.vlgmr.msra.gmra.mrb[0].mxu0 %vm189_vm0, %v2601_v6  ;;  %v65_v32 = vld [vmem:[%s3596_s2] sm:$0x7] }
   0xb   :  { %277 = vmatprep.mubr.bf16.mxu0 %v2541_v1  ;;  %2101 = vmatpush3.bf16.msra.mxu0 %v2398_v8  ;;  %v2761_v34 = vrot.slane %v65_v32, %v69_v31  ;;  %v2763_v35 = vrot.slane %v65_v32, %v73_v33 }
   0xc   :  { %2102 = vmatprep.subr.bf16.mxu0 %v3601_v2 }
   0xf   :  { %2103 = vmatpush3.bf16.msra.mxu0 %v2401_v9 }
  0x10   :  { %2104 = vmatprep.subr.bf16.mxu0 %v3601_v2 }
  0x12   :  { %1864 = vmatmul.mubr.msk.bf16.gmra.mrb[4].mxu0 %vm189_vm0, %v2610_v7 }
  0x13   :  { %287 = vmatprep.mubr.bf16.mxu0 %v2541_v1  ;;  %2105 = vmatpush3.bf16.msra.mxu0 %v2402_v11 }
  0x14   :  { %2106 = vmatprep.subr.bf16.mxu0 %v3601_v2 }
  0x17   :  { %2107 = vmatpush3.bf16.msra.mxu0 %v2403_v12 }
  0x18   :  { %2108 = vmatprep.subr.bf16.mxu0 %v3601_v2 }
  0x1a   :  { %1865 = vmatmul.mubr.msk.bf16.gmra.mrb[8].mxu0 %vm189_vm0, %v2625_v10 }
  0x1b   :  { %297 = vmatprep.mubr.bf16.mxu0 %v2541_v1  ;;  %2109 = vmatpush3.bf16.msra.mxu0 %v2404_v14 }
  0x1c   :  { %2110 = vmatprep.subr.bf16.mxu0 %v3601_v2 }
  0x1f   :  { %2111 = vmatpush3.bf16.msra.mxu0 %v2405_v15 }
  0x20   :  { %2112 = vmatprep.subr.bf16.mxu0 %v3601_v2 }
  0x22   :  { %1866 = vmatmul.mubr.msk.bf16.gmra.mrb[12].mxu0 %vm189_vm0, %v2641_v13 }
  0x23   :  { %307 = vmatprep.mubr.bf16.mxu0 %v2541_v1  ;;  %2113 = vmatpush3.bf16.msra.mxu0 %v2406_v17 }
  0x24   :  { %2114 = vmatprep.subr.bf16.mxu0 %v3601_v2 }
  0x27   :  { %2115 = vmatpush3.bf16.msra.mxu0 %v2407_v18 }
  0x28   :  { %2238 = vmatprep.subr.bf16.mxu0 %v3601_v2 }
  0x2a   :  { %1867 = vmatmul.mubr.msk.bf16.gmra.mrb[16].mxu0 %vm189_vm0, %v2657_v16 }
  0x2b   :  { %317 = vmatprep.mubr.bf16.mxu0 %v2541_v1 }
  0x32   :  { %1868 = vmatmul.mubr.msk.bf16.gmra.mrb[20].mxu0 %vm189_vm0, %v2673_v19 }
  0x33   :  { %327 = vmatprep.mubr.bf16.mxu0 %v2541_v1 }
  0x3a   :  { %1869 = vmatmul.mubr.msk.bf16.gmra.mrb[24].mxu0 %vm189_vm0, %v2682_v20 }
  0x3b   :  { %337 = vmatprep.mubr.bf16.mxu0 %v2541_v1 }
  0x42   :  { %1870 = vmatmul.mubr.msk.bf16.gmra.mrb[28].mxu0 %vm189_vm0, %v2690_v21 }
  0x43   :  { %347 = vmatprep.mubr.bf16.mxu0 %v2541_v1 }
  0x4a   :  { %1871 = vmatmul.mubr.msk.bf16.gmra.mrb[32].mxu0 %vm189_vm0, %v2698_v22 }
  0x4b   :  { %357 = vmatprep.mubr.bf16.mxu0 %v2541_v1 }
  0x52   :  { %1872 = vmatmul.mubr.msk.bf16.gmra.mrb[36].mxu0 %vm189_vm0, %v2706_v23 }
  0x53   :  { %367 = vmatprep.mubr.bf16.mxu0 %v2541_v1 }
  0x5a   :  { %1873 = vmatmul.mubr.msk.bf16.gmra.mrb[40].mxu0 %vm189_vm0, %v2714_v24 }
  0x5b   :  { %377 = vmatprep.mubr.bf16.mxu0 %v2541_v1 }
  0x62   :  { %1874 = vmatmul.mubr.msk.bf16.gmra.mrb[44].mxu0 %vm189_vm0, %v2722_v25 }
  0x63   :  { %387 = vmatprep.mubr.bf16.mxu0 %v2541_v1 }
  0x6a   :  { %1875 = vmatmul.mubr.msk.bf16.gmra.mrb[48].mxu0 %vm189_vm0, %v2730_v26 }
  0x6b   :  { %397 = vmatprep.mubr.bf16.mxu0 %v2541_v1 }
  0x72   :  { %1876 = vmatmul.mubr.msk.bf16.gmra.mrb[52].mxu0 %vm189_vm0, %v2740_v27 }
  0x73   :  { %407 = vmatprep.mubr.bf16.mxu0 %v2541_v1 }
  0x7a   :  { %1877 = vmatmul.mubr.msk.bf16.gmra.mrb[56].mxu0 %vm189_vm0, %v2748_v28 }
  0x7b   :  { %2116 = vmatprep.mubr.msk.bf16.mxu0 %vm2543_vm1, %v3601_v2 }
  0xdd   :  { %v269_v36 = vpop.f32.mrb[0].mxu0 }
  0xde   :  { %v270_v37 = vadd.f32 %v269_v36, %v2761_v34  ;;  %v271_v38 = vpop.f32.mrb[1].mxu0 }
  0xdf   :  { %v272_v39 = vadd.f32 %v271_v38, %v2763_v35  ;;  %v273_v40 = vpop.f32.mrb[2].mxu0 }
  0xe0   :  { %v274_v41 = vadd.f32 %v273_v40, %v2761_v34  ;;  %v275_v42 = vpop.f32.mrb[3].mxu0 }
  0xe1   :  { %v571_v43 = vmul.f32 %v272_v39, %v270_v37  ;;  %v276_v44 = vadd.f32 %v275_v42, %v2763_v35 }
  0xe3   :  { %v572_v45 = vmul.f32 %v276_v44, %v274_v41 }
  0xe5   :  { %v601_v46 = vpack.c.bf16 %v572_v45, %v571_v43  ;;  %v279_v47 = vpop.f32.mrb[4].mxu0 }
  0xe6   :  { %v280_v48 = vadd.f32 %v279_v47, %v2761_v34  ;;  %v281_v49 = vpop.f32.mrb[5].mxu0 }
  0xe7   :  { %v282_v50 = vadd.f32 %v281_v49, %v2763_v35  ;;  %v283_v51 = vpop.f32.mrb[6].mxu0  ;;  %2117 = vmatmul.mubr.bf16.vlgmr.msra.gmra.mrb[60].mxu0 %v601_v46 }
  0xe8   :  { %v284_v52 = vadd.f32 %v283_v51, %v2761_v34  ;;  %v285_v53 = vpop.f32.mrb[7].mxu0  ;;  %2120 = vmatprep.mubr.msk.bf16.mxu0 %vm2543_vm1, %v3601_v2 }
  0xe9   :  { %v573_v54 = vmul.f32 %v282_v50, %v280_v48  ;;  %v286_v55 = vadd.f32 %v285_v53, %v2763_v35 }
  0xeb   :  { %v574_v56 = vmul.f32 %v286_v55, %v284_v52 }
  0xed   :  { %v289_v57 = vpop.f32.mrb[8].mxu0  ;;  %v602_v58 = vpack.c.bf16 %v574_v56, %v573_v54 }
  0xee   :  { %v290_v59 = vadd.f32 %v289_v57, %v2761_v34  ;;  %v291_v60 = vpop.f32.mrb[9].mxu0 }
  0xef   :  { %v292_v61 = vadd.f32 %v291_v60, %v2763_v35  ;;  %v293_v62 = vpop.f32.mrb[10].mxu0  ;;  %2121 = vmatmul.mubr.bf16.gmra.mrb[64].mxu0 %v602_v58 }
  0xf0   :  { %v294_v63 = vadd.f32 %v293_v62, %v2761_v34  ;;  %v295_v0 = vpop.f32.mrb[11].mxu0  ;;  %2124 = vmatprep.mubr.msk.bf16.mxu0 %vm2543_vm1, %v3601_v2 }
  0xf1   :  { %v575_v1 = vmul.f32 %v292_v61, %v290_v59  ;;  %v296_v3 = vadd.f32 %v295_v0, %v2763_v35 }
  0xf3   :  { %v576_v4 = vmul.f32 %v296_v3, %v294_v63 }
  0xf5   :  { %v299_v5 = vpop.f32.mrb[12].mxu0  ;;  %v603_v8 = vpack.c.bf16 %v576_v4, %v575_v1 }
  0xf6   :  { %v300_v9 = vadd.f32 %v299_v5, %v2761_v34  ;;  %v301_v11 = vpop.f32.mrb[13].mxu0 }
  0xf7   :  { %v302_v12 = vadd.f32 %v301_v11, %v2763_v35  ;;  %v303_v14 = vpop.f32.mrb[14].mxu0  ;;  %2125 = vmatmul.mubr.bf16.gmra.mrb[68].mxu0 %v603_v8 }
  0xf8   :  { %v304_v15 = vadd.f32 %v303_v14, %v2761_v34  ;;  %v305_v17 = vpop.f32.mrb[15].mxu0  ;;  %2128 = vmatprep.mubr.msk.bf16.mxu0 %vm2543_vm1, %v3601_v2 }
  0xf9   :  { %v577_v18 = vmul.f32 %v302_v12, %v300_v9  ;;  %v306_v29 = vadd.f32 %v305_v17, %v2763_v35 }
  0xfb   :  { %v578_v31 = vmul.f32 %v306_v29, %v304_v15 }
  0xfd   :  { %v309_v32 = vpop.f32.mrb[16].mxu0  ;;  %v604_v33 = vpack.c.bf16 %v578_v31, %v577_v18 }
  0xfe   :  { %v310_v36 = vadd.f32 %v309_v32, %v2761_v34  ;;  %v311_v37 = vpop.f32.mrb[17].mxu0 }
  0xff   :  { %v312_v38 = vadd.f32 %v311_v37, %v2763_v35  ;;  %v313_v39 = vpop.f32.mrb[18].mxu0  ;;  %2129 = vmatmul.mubr.bf16.gmra.mrb[72].mxu0 %v604_v33 }
 0x100   :  { %v314_v40 = vadd.f32 %v313_v39, %v2761_v34  ;;  %v315_v41 = vpop.f32.mrb[19].mxu0  ;;  %2132 = vmatprep.mubr.msk.bf16.mxu0 %vm2543_vm1, %v3601_v2 }
 0x101   :  { %v579_v42 = vmul.f32 %v312_v38, %v310_v36  ;;  %v316_v43 = vadd.f32 %v315_v41, %v2763_v35 }
 0x103   :  { %v580_v44 = vmul.f32 %v316_v43, %v314_v40 }
 0x105   :  { %v319_v45 = vpop.f32.mrb[20].mxu0  ;;  %v605_v46 = vpack.c.bf16 %v580_v44, %v579_v42 }
 0x106   :  { %v320_v47 = vadd.f32 %v319_v45, %v2761_v34  ;;  %v321_v48 = vpop.f32.mrb[21].mxu0 }
 0x107   :  { %v322_v49 = vadd.f32 %v321_v48, %v2763_v35  ;;  %v323_v50 = vpop.f32.mrb[22].mxu0  ;;  %2133 = vmatmul.mubr.bf16.gmra.mrb[76].mxu0 %v605_v46 }
 0x108   :  { %v324_v51 = vadd.f32 %v323_v50, %v2761_v34  ;;  %v325_v52 = vpop.f32.mrb[23].mxu0  ;;  %2136 = vmatprep.mubr.msk.bf16.mxu0 %vm2543_vm1, %v3601_v2 }
 0x109   :  { %v581_v53 = vmul.f32 %v322_v49, %v320_v47  ;;  %v326_v54 = vadd.f32 %v325_v52, %v2763_v35 }
 0x10b   :  { %v582_v55 = vmul.f32 %v326_v54, %v324_v51 }
 0x10d   :  { %v329_v56 = vpop.f32.mrb[24].mxu0  ;;  %v606_v57 = vpack.c.bf16 %v582_v55, %v581_v53 }
 0x10e   :  { %v330_v58 = vadd.f32 %v329_v56, %v2761_v34  ;;  %v331_v59 = vpop.f32.mrb[25].mxu0 }
 0x10f   :  { %v332_v60 = vadd.f32 %v331_v59, %v2763_v35  ;;  %v333_v61 = vpop.f32.mrb[26].mxu0  ;;  %2137 = vmatmul.mubr.bf16.gmra.mrb[80].mxu0 %v606_v57 }
 0x110   :  { %v334_v62 = vadd.f32 %v333_v61, %v2761_v34  ;;  %v335_v63 = vpop.f32.mrb[27].mxu0  ;;  %2140 = vmatprep.mubr.msk.bf16.mxu0 %vm2543_vm1, %v3601_v2 }
 0x111   :  { %v583_v0 = vmul.f32 %v332_v60, %v330_v58  ;;  %v336_v1 = vadd.f32 %v335_v63, %v2763_v35 }
 0x113   :  { %v584_v3 = vmul.f32 %v336_v1, %v334_v62 }
 0x115   :  { %v339_v4 = vpop.f32.mrb[28].mxu0  ;;  %v607_v5 = vpack.c.bf16 %v584_v3, %v583_v0 }
 0x116   :  { %v340_v8 = vadd.f32 %v339_v4, %v2761_v34  ;;  %v341_v9 = vpop.f32.mrb[29].mxu0 }
 0x117   :  { %v342_v11 = vadd.f32 %v341_v9, %v2763_v35  ;;  %v343_v12 = vpop.f32.mrb[30].mxu0  ;;  %2141 = vmatmul.mubr.bf16.gmra.mrb[84].mxu0 %v607_v5 }
 0x118   :  { %v344_v14 = vadd.f32 %v343_v12, %v2761_v34  ;;  %v345_v15 = vpop.f32.mrb[31].mxu0  ;;  %2144 = vmatprep.mubr.msk.bf16.mxu0 %vm2543_vm1, %v3601_v2 }
 0x119   :  { %v585_v17 = vmul.f32 %v342_v11, %v340_v8  ;;  %v346_v18 = vadd.f32 %v345_v15, %v2763_v35 }
 0x11b   :  { %v586_v29 = vmul.f32 %v346_v18, %v344_v14 }
 0x11d   :  { %v349_v31 = vpop.f32.mrb[32].mxu0  ;;  %v608_v32 = vpack.c.bf16 %v586_v29, %v585_v17 }
 0x11e   :  { %v350_v33 = vadd.f32 %v349_v31, %v2761_v34  ;;  %v351_v36 = vpop.f32.mrb[33].mxu0 }
 0x11f   :  { %v352_v37 = vadd.f32 %v351_v36, %v2763_v35  ;;  %v353_v38 = vpop.f32.mrb[34].mxu0  ;;  %2145 = vmatmul.mubr.bf16.gmra.mrb[88].mxu0 %v608_v32 }
 0x120   :  { %v354_v39 = vadd.f32 %v353_v38, %v2761_v34  ;;  %v355_v40 = vpop.f32.mrb[35].mxu0  ;;  %2148 = vmatprep.mubr.msk.bf16.mxu0 %vm2543_vm1, %v3601_v2 }
 0x121   :  { %v587_v41 = vmul.f32 %v352_v37, %v350_v33  ;;  %v356_v42 = vadd.f32 %v355_v40, %v2763_v35 }
 0x123   :  { %v588_v43 = vmul.f32 %v356_v42, %v354_v39 }
 0x125   :  { %v359_v44 = vpop.f32.mrb[36].mxu0  ;;  %v609_v45 = vpack.c.bf16 %v588_v43, %v587_v41 }
 0x126   :  { %v360_v46 = vadd.f32 %v359_v44, %v2761_v34  ;;  %v361_v47 = vpop.f32.mrb[37].mxu0 }
 0x127   :  { %v362_v48 = vadd.f32 %v361_v47, %v2763_v35  ;;  %v363_v49 = vpop.f32.mrb[38].mxu0  ;;  %2149 = vmatmul.mubr.bf16.gmra.mrb[92].mxu0 %v609_v45 }
 0x128   :  { %v364_v50 = vadd.f32 %v363_v49, %v2761_v34  ;;  %v365_v51 = vpop.f32.mrb[39].mxu0  ;;  %2152 = vmatprep.mubr.msk.bf16.mxu0 %vm2543_vm1, %v3601_v2 }
 0x129   :  { %v589_v52 = vmul.f32 %v362_v48, %v360_v46  ;;  %v366_v53 = vadd.f32 %v365_v51, %v2763_v35 }
 0x12b   :  { %v590_v54 = vmul.f32 %v366_v53, %v364_v50 }
 0x12d   :  { %v369_v55 = vpop.f32.mrb[40].mxu0  ;;  %v610_v56 = vpack.c.bf16 %v590_v54, %v589_v52 }
 0x12e   :  { %v370_v57 = vadd.f32 %v369_v55, %v2761_v34  ;;  %v371_v58 = vpop.f32.mrb[41].mxu0 }
 0x12f   :  { %v372_v59 = vadd.f32 %v371_v58, %v2763_v35  ;;  %v373_v60 = vpop.f32.mrb[42].mxu0  ;;  %2153 = vmatmul.mubr.bf16.gmra.mrb[96].mxu0 %v610_v56 }
 0x130   :  { %v374_v61 = vadd.f32 %v373_v60, %v2761_v34  ;;  %v375_v62 = vpop.f32.mrb[43].mxu0  ;;  %2156 = vmatprep.mubr.msk.bf16.mxu0 %vm2543_vm1, %v3601_v2 }
 0x131   :  { %v591_v63 = vmul.f32 %v372_v59, %v370_v57  ;;  %v376_v0 = vadd.f32 %v375_v62, %v2763_v35 }
 0x133   :  { %v592_v1 = vmul.f32 %v376_v0, %v374_v61 }
 0x135   :  { %v379_v3 = vpop.f32.mrb[44].mxu0  ;;  %v611_v4 = vpack.c.bf16 %v592_v1, %v591_v63 }
 0x136   :  { %v380_v5 = vadd.f32 %v379_v3, %v2761_v34  ;;  %v381_v8 = vpop.f32.mrb[45].mxu0  ;;  %v2408_v3 = vld [vmem:[%s3593_s1 + $0x8] ss:$12 sps:$4 sm:$0xff]  }
 0x137   :  { %v382_v9 = vadd.f32 %v381_v8, %v2763_v35  ;;  %v383_v11 = vpop.f32.mrb[46].mxu0  ;;  %2157 = vmatmul.mubr.bf16.gmra.mrb[100].mxu0 %v611_v4  ;;  %2037 = vmatpush3.bf16.msra.mxu1 %v2408_v3 }
 0x138   :  { %v384_v12 = vadd.f32 %v383_v11, %v2761_v34  ;;  %v385_v14 = vpop.f32.mrb[47].mxu0  ;;  %2160 = vmatprep.mubr.msk.bf16.mxu0 %vm2543_vm1, %v3601_v2  ;;  %2038 = vmatprep.subr.bf16.mxu1 %v3601_v2 }
 0x139   :  { %v593_v15 = vmul.f32 %v382_v9, %v380_v5  ;;  %v386_v17 = vadd.f32 %v385_v14, %v2763_v35 }
 0x13b   :  { %v594_v18 = vmul.f32 %v386_v17, %v384_v12 }
 0x13d   :  { %v389_v29 = vpop.f32.mrb[48].mxu0  ;;  %v612_v31 = vpack.c.bf16 %v594_v18, %v593_v15 }
 0x13e   :  { %v390_v32 = vadd.f32 %v389_v29, %v2761_v34  ;;  %v391_v33 = vpop.f32.mrb[49].mxu0 }
 0x13f   :  { %v392_v36 = vadd.f32 %v391_v33, %v2763_v35  ;;  %v393_v37 = vpop.f32.mrb[50].mxu0  ;;  %2161 = vmatmul.mubr.bf16.gmra.mrb[104].mxu0 %v612_v31 }
 0x140   :  { %v394_v38 = vadd.f32 %v393_v37, %v2761_v34  ;;  %v395_v39 = vpop.f32.mrb[51].mxu0  ;;  %2164 = vmatprep.mubr.msk.bf16.mxu0 %vm2543_vm1, %v3601_v2 }
 0x141   :  { %v595_v40 = vmul.f32 %v392_v36, %v390_v32  ;;  %v396_v41 = vadd.f32 %v395_v39, %v2763_v35 }
 0x143   :  { %v596_v42 = vmul.f32 %v396_v41, %v394_v38 }
 0x145   :  { %v399_v43 = vpop.f32.mrb[52].mxu0  ;;  %v613_v44 = vpack.c.bf16 %v596_v42, %v595_v40 }
 0x146   :  { %v400_v45 = vadd.f32 %v399_v43, %v2761_v34  ;;  %v401_v46 = vpop.f32.mrb[53].mxu0 }
 0x147   :  { %v402_v47 = vadd.f32 %v401_v46, %v2763_v35  ;;  %v403_v48 = vpop.f32.mrb[54].mxu0  ;;  %2165 = vmatmul.mubr.bf16.gmra.mrb[108].mxu0 %v613_v44 }
 0x148   :  { %v404_v49 = vadd.f32 %v403_v48, %v2761_v34  ;;  %v405_v50 = vpop.f32.mrb[55].mxu0  ;;  %2168 = vmatprep.mubr.msk.bf16.mxu0 %vm2543_vm1, %v3601_v2 }
 0x149   :  { %v597_v51 = vmul.f32 %v402_v47, %v400_v45  ;;  %v406_v52 = vadd.f32 %v405_v50, %v2763_v35 }
 0x14b   :  { %v598_v53 = vmul.f32 %v406_v52, %v404_v49 }
 0x14d   :  { %v409_v54 = vpop.f32.mrb[56].mxu0  ;;  %v614_v55 = vpack.c.bf16 %v598_v53, %v597_v51 }
 0x14e   :  { %v410_v56 = vadd.f32 %v409_v54, %v2761_v34  ;;  %v411_v57 = vpop.f32.mrb[57].mxu0 }
 0x14f   :  { %v412_v58 = vadd.f32 %v411_v57, %v2763_v35  ;;  %v413_v59 = vpop.f32.mrb[58].mxu0  ;;  %2169 = vmatmul.mubr.bf16.gmra.mrb[112].mxu0 %v614_v55 }
 0x150   :  { %v414_v60 = vadd.f32 %v413_v59, %v2761_v34  ;;  %v415_v61 = vpop.f32.mrb[59].mxu0  ;;  %2172 = vmatprep.mubr.msk.bf16.mxu0 %vm2543_vm1, %v3601_v2  ;;  %v2409_v34 = vld [vmem:[%s3593_s1 + $0x20] ss:$12 sps:$4 sm:$0xff]  }
 0x151   :  { %v599_v62 = vmul.f32 %v412_v58, %v410_v56  ;;  %v416_v63 = vadd.f32 %v415_v61, %v2763_v35  ;;  %2039 = vmatpush3.bf16.msra.mxu1 %v2409_v34  ;;  %v2410_v35 = vld [vmem:[%s3597_s4] sm:$0xff]  }
 0x152   :  { %2176 = vmatprep.subr.bf16.mxu1 %v3601_v2 }
 0x153   :  { %v600_v0 = vmul.f32 %v416_v63, %v414_v60 }
 0x154   :  { %2041 = vmatmul.mubr.msk.bf16.vlgmr.msra.gmra.mrb[0].mxu1 %vm189_vm0, %v2601_v6 }
 0x155   :  { %v615_v1 = vpack.c.bf16 %v600_v0, %v599_v62  ;;  %2044 = vmatprep.mubr.msk.bf16.mxu1 %vm2543_vm1, %v3601_v2  ;;  %2177 = vmatpush3.bf16.msra.mxu1 %v2410_v35 }
 0x156   :  { %2300 = vmatprep.subr.bf16.mxu1 %v3601_v2 }
 0x157   :  { %2173 = vmatmul.mubr.bf16.gmra.mrb[116].mxu0 %v615_v1 }
 0x158   :  { %2240 = vmatprep.mubr.msk.bf16.mxu0 %vm2543_vm1, %v3601_v2 }
 0x15c   :  { %2045 = vmatmul.mubr.msk.bf16.gmra.mrb[4].mxu1 %vm189_vm0, %v2610_v7 }
 0x15d   :  { %2048 = vmatprep.mubr.msk.bf16.mxu1 %vm2543_vm1, %v3601_v2 }
 0x164   :  { %2049 = vmatmul.mubr.msk.bf16.gmra.mrb[8].mxu1 %vm189_vm0, %v2625_v10 }
 0x165   :  { %2052 = vmatprep.mubr.msk.bf16.mxu1 %vm2543_vm1, %v3601_v2 }
 0x16c   :  { %2053 = vmatmul.mubr.msk.bf16.gmra.mrb[12].mxu1 %vm189_vm0, %v2641_v13 }
 0x16d   :  { %2056 = vmatprep.mubr.msk.bf16.mxu1 %vm2543_vm1, %v3601_v2 }
 0x174   :  { %2057 = vmatmul.mubr.msk.bf16.gmra.mrb[16].mxu1 %vm189_vm0, %v2657_v16 }
 0x175   :  { %2060 = vmatprep.mubr.msk.bf16.mxu1 %vm2543_vm1, %v3601_v2 }
 0x17c   :  { %2061 = vmatmul.mubr.msk.bf16.gmra.mrb[20].mxu1 %vm189_vm0, %v2673_v19 }
 0x17d   :  { %2064 = vmatprep.mubr.msk.bf16.mxu1 %vm2543_vm1, %v3601_v2 }
 0x184   :  { %2065 = vmatmul.mubr.msk.bf16.gmra.mrb[24].mxu1 %vm189_vm0, %v2682_v20 }
 0x185   :  { %2068 = vmatprep.mubr.msk.bf16.mxu1 %vm2543_vm1, %v3601_v2 }
 0x18c   :  { %2069 = vmatmul.mubr.msk.bf16.gmra.mrb[28].mxu1 %vm189_vm0, %v2690_v21 }
 0x18d   :  { %2072 = vmatprep.mubr.msk.bf16.mxu1 %vm2543_vm1, %v3601_v2 }
 0x194   :  { %2073 = vmatmul.mubr.msk.bf16.gmra.mrb[32].mxu1 %vm189_vm0, %v2698_v22 }
 0x195   :  { %2076 = vmatprep.mubr.msk.bf16.mxu1 %vm2543_vm1, %v3601_v2 }
 0x19c   :  { %2077 = vmatmul.mubr.msk.bf16.gmra.mrb[36].mxu1 %vm189_vm0, %v2706_v23 }
 0x19d   :  { %2080 = vmatprep.mubr.msk.bf16.mxu1 %vm2543_vm1, %v3601_v2 }
 0x1a4   :  { %2081 = vmatmul.mubr.msk.bf16.gmra.mrb[40].mxu1 %vm189_vm0, %v2714_v24 }
 0x1a5   :  { %2084 = vmatprep.mubr.msk.bf16.mxu1 %vm2543_vm1, %v3601_v2 }
 0x1ac   :  { %2085 = vmatmul.mubr.msk.bf16.gmra.mrb[44].mxu1 %vm189_vm0, %v2722_v25 }
 0x1ad   :  { %2088 = vmatprep.mubr.msk.bf16.mxu1 %vm2543_vm1, %v3601_v2 }
 0x1b4   :  { %2089 = vmatmul.mubr.msk.bf16.gmra.mrb[48].mxu1 %vm189_vm0, %v2730_v26 }
 0x1b5   :  { %2092 = vmatprep.mubr.msk.bf16.mxu1 %vm2543_vm1, %v3601_v2 }
 0x1ba   :  { %v2911_v6 = vpop.f32.mrb[60].mxu0 }
 0x1bb   :  { %v2118_v7 = vpop.f32.mrb[61].mxu0  ;;  %v834_v10 = vsel %vm833_vm2, %v2911_v6, -inf }
 0x1bc   :  { %835 = vmax.xlane.f32.xlu0 %v834_v10  ;;  %v2915_v13 = vpop.f32.mrb[62].mxu0  ;;  %2093 = vmatmul.mubr.msk.bf16.gmra.mrb[52].mxu1 %vm189_vm0, %v2740_v27 }
 0x1bd   :  { %v2119_v16 = vpop.f32.mrb[63].mxu0  ;;  %v837_v19 = vsel %vm833_vm2, %v2915_v13, -inf  ;;  %2096 = vmatprep.mubr.msk.bf16.mxu1 %vm2543_vm1, %v3601_v2 }
 0x1c0   :  { %838 = vmax.xlane.f32.xlu0 %v837_v19 }
 0x1c2   :  { %v2923_v20 = vpop.f32.mrb[64].mxu0 }
 0x1c3   :  { %v2122_v21 = vpop.f32.mrb[65].mxu0  ;;  %v840_v22 = vsel %vm833_vm2, %v2923_v20, -inf }
 0x1c4   :  { %841 = vmax.xlane.f32.xlu1 %v840_v22  ;;  %v2927_v23 = vpop.f32.mrb[66].mxu0  ;;  %2097 = vmatmul.mubr.msk.bf16.gmra.mrb[56].mxu1 %vm189_vm0, %v2748_v28 }
 0x1c5   :  { %v2123_v24 = vpop.f32.mrb[67].mxu0  ;;  %v843_v25 = vsel %vm833_vm2, %v2927_v23, -inf  ;;  %2178 = vmatprep.mubr.msk.bf16.mxu1 %vm2543_vm1, %v3601_v2 }
 0x1c8   :  { %844 = vmax.xlane.f32.xlu1 %v843_v25 }
 0x1ca   :  { %v2935_v4 = vpop.f32.mrb[68].mxu0 }
 0x1cb   :  { %v2126_v5 = vpop.f32.mrb[69].mxu0  ;;  %v846_v8 = vsel %vm833_vm2, %v2935_v4, -inf }
 0x1cc   :  { %847 = vmax.xlane.f32.xlu0 %v846_v8  ;;  %v2939_v9 = vpop.f32.mrb[70].mxu0 }
 0x1cd   :  { %v2127_v26 = vpop.f32.mrb[71].mxu0  ;;  %v849_v11 = vsel %vm833_vm2, %v2939_v9, -inf }
 0x1ce   :  { %850 = vmax.xlane.f32.xlu1 %v849_v11 }
 0x1d2   :  { %v2947_v12 = vpop.f32.mrb[72].mxu0 }
 0x1d3   :  { %v2130_v14 = vpop.f32.mrb[73].mxu0  ;;  %v852_v15 = vsel %vm833_vm2, %v2947_v12, -inf }
 0x1d4   :  { %853 = vmax.xlane.f32.xlu0 %v852_v15  ;;  %v2951_v17 = vpop.f32.mrb[74].mxu0 }
 0x1d5   :  { %v2131_v27 = vpop.f32.mrb[75].mxu0  ;;  %v855_v18 = vsel %vm833_vm2, %v2951_v17, -inf }
 0x1d6   :  { %856 = vmax.xlane.f32.xlu1 %v855_v18 }
 0x1da   :  { %v2959_v29 = vpop.f32.mrb[76].mxu0 }
 0x1db   :  { %v2134_v31 = vpop.f32.mrb[77].mxu0  ;;  %v858_v32 = vsel %vm833_vm2, %v2959_v29, -inf }
 0x1dc   :  { %859 = vmax.xlane.f32.xlu0 %v858_v32  ;;  %v2963_v33 = vpop.f32.mrb[78].mxu0 }
 0x1dd   :  { %v2135_v36 = vpop.f32.mrb[79].mxu0  ;;  %v861_v28 = vsel %vm833_vm2, %v2963_v33, -inf }
 0x1de   :  { %862 = vmax.xlane.f32.xlu1 %v861_v28 }
 0x1e2   :  { %v2967_v37 = vpop.f32.mrb[80].mxu0 }
 0x1e3   :  { %v2138_v38 = vpop.f32.mrb[81].mxu0  ;;  %v864_v39 = vsel %vm833_vm2, %v2967_v37, -inf }
 0x1e4   :  { %865 = vmax.xlane.f32.xlu0 %v864_v39  ;;  %v2971_v40 = vpop.f32.mrb[82].mxu0 }
 0x1e5   :  { %v2139_v41 = vpop.f32.mrb[83].mxu0  ;;  %v867_v42 = vsel %vm833_vm2, %v2971_v40, -inf }
 0x1e6   :  { %868 = vmax.xlane.f32.xlu1 %v867_v42 }
 0x1ea   :  { %v2975_v43 = vpop.f32.mrb[84].mxu0 }
 0x1eb   :  { %v2142_v44 = vpop.f32.mrb[85].mxu0  ;;  %v870_v45 = vsel %vm833_vm2, %v2975_v43, -inf }
 0x1ec   :  { %871 = vmax.xlane.f32.xlu0 %v870_v45  ;;  %v2979_v46 = vpop.f32.mrb[86].mxu0 }
 0x1ed   :  { %v2143_v47 = vpop.f32.mrb[87].mxu0  ;;  %v873_v48 = vsel %vm833_vm2, %v2979_v46, -inf }
 0x1ee   :  { %874 = vmax.xlane.f32.xlu1 %v873_v48 }
 0x1f2   :  { %v2983_v49 = vpop.f32.mrb[88].mxu0 }
 0x1f3   :  { %v2146_v50 = vpop.f32.mrb[89].mxu0  ;;  %v876_v51 = vsel %vm833_vm2, %v2983_v49, -inf }
 0x1f4   :  { %877 = vmax.xlane.f32.xlu0 %v876_v51  ;;  %v2987_v52 = vpop.f32.mrb[90].mxu0 }
 0x1f5   :  { %v2147_v53 = vpop.f32.mrb[91].mxu0  ;;  %v879_v54 = vsel %vm833_vm2, %v2987_v52, -inf }
 0x1f6   :  { %880 = vmax.xlane.f32.xlu1 %v879_v54 }
 0x1fa   :  { %v2991_v55 = vpop.f32.mrb[92].mxu0 }
 0x1fb   :  { %v2150_v56 = vpop.f32.mrb[93].mxu0  ;;  %v882_v57 = vsel %vm833_vm2, %v2991_v55, -inf }
 0x1fc   :  { %883 = vmax.xlane.f32.xlu0 %v882_v57  ;;  %v2995_v58 = vpop.f32.mrb[94].mxu0 }
 0x1fd   :  { %v2151_v59 = vpop.f32.mrb[95].mxu0  ;;  %v885_v60 = vsel %vm833_vm2, %v2995_v58, -inf }
 0x1fe   :  { %886 = vmax.xlane.f32.xlu1 %v885_v60 }
 0x202   :  { %v2999_v61 = vpop.f32.mrb[96].mxu0 }
 0x203   :  { %v2154_v62 = vpop.f32.mrb[97].mxu0  ;;  %v888_v63 = vsel %vm833_vm2, %v2999_v61, -inf }
 0x204   :  { %889 = vmax.xlane.f32.xlu0 %v888_v63  ;;  %v3003_v0 = vpop.f32.mrb[98].mxu0 }
 0x205   :  { %v2155_v1 = vpop.f32.mrb[99].mxu0  ;;  %v891_v3 = vsel %vm833_vm2, %v3003_v0, -inf }
 0x206   :  { %892 = vmax.xlane.f32.xlu1 %v891_v3 }
 0x20a   :  { %v3007_v34 = vpop.f32.mrb[100].mxu0 }
 0x20b   :  { %v2158_v35 = vpop.f32.mrb[101].mxu0  ;;  %v894_v7 = vsel %vm833_vm2, %v3007_v34, -inf }
 0x20c   :  { %895 = vmax.xlane.f32.xlu0 %v894_v7  ;;  %v3011_v10 = vpop.f32.mrb[102].mxu0  ;;  %v2411_v35 = vld [vmem:[%s3598_s5] sm:$0xff]  }
 0x20d   :  { %v2159_v16 = vpop.f32.mrb[103].mxu0  ;;  %v897_v19 = vsel %vm833_vm2, %v3011_v10, -inf  ;;  %2239 = vmatpush3.bf16.msra.mxu0 %v2411_v35 }
 0x20e   :  { %898 = vmax.xlane.f32.xlu1 %v897_v19 }
 0x212   :  { %v3015_v21 = vpop.f32.mrb[104].mxu0 }
 0x213   :  { %v2162_v22 = vpop.f32.mrb[105].mxu0  ;;  %v900_v24 = vsel %vm833_vm2, %v3015_v21, -inf }
 0x214   :  { %901 = vmax.xlane.f32.xlu0 %v900_v24  ;;  %v3019_v25 = vpop.f32.mrb[106].mxu0 }
 0x215   :  { %v2163_v5 = vpop.f32.mrb[107].mxu0  ;;  %v903_v8 = vsel %vm833_vm2, %v3019_v25, -inf }
 0x216   :  { %904 = vmax.xlane.f32.xlu1 %v903_v8 }
 0x21a   :  { %v3023_v26 = vpop.f32.mrb[108].mxu0 }
 0x21b   :  { %v2166_v11 = vpop.f32.mrb[109].mxu0  ;;  %v906_v14 = vsel %vm833_vm2, %v3023_v26, -inf }
 0x21c   :  { %907 = vmax.xlane.f32.xlu0 %v906_v14  ;;  %v3027_v15 = vpop.f32.mrb[110].mxu0 }
 0x21d   :  { %v2167_v27 = vpop.f32.mrb[111].mxu0  ;;  %v909_v18 = vsel %vm833_vm2, %v3027_v15, -inf }
 0x21e   :  { %910 = vmax.xlane.f32.xlu1 %v909_v18 }
 0x222   :  { %v3031_v31 = vpop.f32.mrb[112].mxu0 }
 0x223   :  { %v2170_v32 = vpop.f32.mrb[113].mxu0  ;;  %v912_v36 = vsel %vm833_vm2, %v3031_v31, -inf }
 0x224   :  { %913 = vmax.xlane.f32.xlu0 %v912_v36  ;;  %v3035_v28 = vpop.f32.mrb[114].mxu0 }
 0x225   :  { %v2171_v38 = vpop.f32.mrb[115].mxu0  ;;  %v915_v39 = vsel %vm833_vm2, %v3035_v28, -inf }
 0x226   :  { %916 = vmax.xlane.f32.xlu1 %v915_v39 }
 0x227   :  { %v3047_v50 = vpop.f32.mrb[0].mxu1 }
 0x228   :  { %v2042_v51 = vpop.f32.mrb[1].mxu1 }
 0x229   :  { %v3049_v53 = vpop.f32.mrb[2].mxu1 }
 0x22a   :  { %v3039_v41 = vpop.f32.mrb[116].mxu0  ;;  %v2043_v54 = vpop.f32.mrb[3].mxu1 }
 0x22b   :  { %v2174_v42 = vpop.f32.mrb[117].mxu0  ;;  %v918_v44 = vsel %vm833_vm2, %v3039_v41, -inf }
 0x22c   :  { %919 = vmax.xlane.f32.xlu0 %v918_v44  ;;  %v3043_v45 = vpop.f32.mrb[118].mxu0 }
 0x22d   :  { %v2175_v47 = vpop.f32.mrb[119].mxu0  ;;  %v921_v48 = vsel %vm833_vm2, %v3043_v45, -inf }
 0x22e   :  { %922 = vmax.xlane.f32.xlu1 %v921_v48 }
 0x22f   :  { %v3051_v56 = vpop.f32.mrb[4].mxu1 }
 0x230   :  { %v2046_v57 = vpop.f32.mrb[5].mxu1 }
 0x231   :  { %v3053_v59 = vpop.f32.mrb[6].mxu1 }
 0x232   :  { %v2047_v60 = vpop.f32.mrb[7].mxu1 }
 0x237   :  { %v3055_v62 = vpop.f32.mrb[8].mxu1 }
 0x238   :  { %v2050_v63 = vpop.f32.mrb[9].mxu1 }
 0x239   :  { %v3057_v3 = vpop.f32.mrb[10].mxu1 }
 0x23a   :  { %v2051_v16 = vpop.f32.mrb[11].mxu1 }
 0x23f   :  { %v3064_v5 = vpop.f32.mrb[12].mxu1 }
 0x240   :  { %v2054_v11 = vpop.f32.mrb[13].mxu1 }
 0x241   :  { %v3066_v27 = vpop.f32.mrb[14].mxu1 }
 0x242   :  { %v2055_v32 = vpop.f32.mrb[15].mxu1 }
 0x247   :  { %v3070_v39 = vpop.f32.mrb[16].mxu1 }
 0x249   :  { %v836_v1 = vpop.xlane.xlu0 %835 }
 0x24a   :  { %v924_v7 = vsub.f32 %v2911_v6, %v836_v1 }
 0x24c   :  { %v954_v19 = vmul.f32 1.442695, %v924_v7 }
 0x24d   :  { %v839_v22 = vpop.xlane.xlu0 %838 }
 0x24e   :  { %v925_v24 = vsub.f32 %v2915_v13, %v839_v22  ;;  %2420 = vpow2.f32 %v954_v19  ;;  %v2058_v13 = vpop.f32.mrb[17].mxu1 }
 0x24f   :  { %v3072_v47 = vpop.f32.mrb[18].mxu1 }
 0x250   :  { %v956_v8 = vmul.f32 1.442695, %v925_v24  ;;  %v2059_v51 = vpop.f32.mrb[19].mxu1 }
 0x251   :  { %v842_v14 = vpop.xlane.xlu1 %841  ;;  %v3083_v35 = vpop.f32.mrb[20].mxu1 }
 0x252   :  { %2422 = vpow2.f32 %v956_v8  ;;  %v926_v18 = vsub.f32 %v2923_v20, %v842_v14 }
 0x254   :  { %v958_v36 = vmul.f32 1.442695, %v926_v18 }
 0x255   :  { %v845_v6 = vpop.xlane.xlu1 %844 }
 0x256   :  { %v927_v38 = vsub.f32 %v2927_v23, %v845_v6  ;;  %2424 = vpow2.f32 %v958_v36 }
 0x258   :  { %v960_v42 = vmul.f32 1.442695, %v927_v38  ;;  %v3075_v54 = vpop.eup %2420 }
 0x259   :  { %v848_v44 = vpop.xlane.xlu0 %847 }
 0x25a   :  { %2426 = vpow2.f32 %v960_v42  ;;  %v928_v48 = vsub.f32 %v2935_v4, %v848_v44  ;;  %v2062_v4 = vpop.f32.mrb[21].mxu1 }
 0x25b   :  { %v851_v20 = vpop.xlane.xlu1 %850  ;;  %v3087_v16 = vpop.f32.mrb[22].mxu1 }
 0x25c   :  { %v3077_v57 = vpop.eup %2422  ;;  %v929_v60 = vsub.f32 %v2939_v9, %v851_v20  ;;  %v962_v63 = vmul.f32 1.442695, %v928_v48  ;;  %v2063_v19 = vpop.f32.mrb[23].mxu1 }
 0x25d   :  { %v1014_v23 = vpack.c.bf16 %v3077_v57, %v3075_v54  ;;  %v3098_v36 = vpop.f32.mrb[24].mxu1 }
 0x25e   :  { %v964_v1 = vmul.f32 1.442695, %v929_v60 }
 0x25f   :  { %2179 = vmatmul.mubr.msk.bf16.vlgmr.msra.gmra.mrb[60].mxu1 %vm833_vm2, %v1014_v23 }
 0x260   :  { %2428 = vpow2.f32 %v964_v1  ;;  %2182 = vmatprep.mubr.msk.bf16.mxu1 %vm2543_vm1, %v3601_v2  ;;  %v3090_v22 = vpop.eup %2424 }
 0x261   :  { %v854_v7 = vpop.xlane.xlu0 %853  ;;  %2430 = vpow2.f32 %v962_v63 }
 0x262   :  { %v930_v9 = vsub.f32 %v2947_v12, %v854_v7  ;;  %v2066_v12 = vpop.f32.mrb[25].mxu1 }
 0x263   :  { %v857_v24 = vpop.xlane.xlu1 %856  ;;  %v3102_v38 = vpop.f32.mrb[26].mxu1 }
 0x264   :  { %v3092_v8 = vpop.eup %2426  ;;  %v931_v11 = vsub.f32 %v2951_v17, %v857_v24  ;;  %v966_v18 = vmul.f32 1.442695, %v930_v9  ;;  %v2067_v13 = vpop.f32.mrb[27].mxu1 }
 0x265   :  { %v1015_v14 = vpack.c.bf16 %v3092_v8, %v3090_v22  ;;  %v3113_v63 = vpop.f32.mrb[28].mxu1 }
 0x266   :  { %v968_v32 = vmul.f32 1.442695, %v931_v11 }
 0x267   :  { %2183 = vmatmul.mubr.msk.bf16.gmra.mrb[64].mxu1 %vm833_vm2, %v1015_v14 }
 0x268   :  { %2432 = vpow2.f32 %v968_v32  ;;  %2186 = vmatprep.mubr.msk.bf16.mxu1 %vm2543_vm1, %v3601_v2 }
 0x269   :  { %v860_v6 = vpop.xlane.xlu0 %859  ;;  %2434 = vpow2.f32 %v966_v18 }
 0x26a   :  { %v3104_v42 = vpop.eup %2428  ;;  %v932_v17 = vsub.f32 %v2959_v29, %v860_v6  ;;  %v2070_v29 = vpop.f32.mrb[29].mxu1 }
 0x26b   :  { %v863_v44 = vpop.xlane.xlu1 %862  ;;  %v3107_v48 = vpop.eup %2430 }
 0x26c   :  { %v933_v51 = vsub.f32 %v2963_v33, %v863_v44  ;;  %v1016_v20 = vpack.c.bf16 %v3104_v42, %v3107_v48  ;;  %v970_v60 = vmul.f32 1.442695, %v932_v17  ;;  %v3117_v4 = vpop.f32.mrb[30].mxu1 }
 0x26d   :  { %v2071_v9 = vpop.f32.mrb[31].mxu1 }
 0x26e   :  { %v972_v23 = vmul.f32 1.442695, %v933_v51  ;;  %v3128_v12 = vpop.f32.mrb[32].mxu1 }
 0x26f   :  { %2187 = vmatmul.mubr.msk.bf16.gmra.mrb[68].mxu1 %vm833_vm2, %v1016_v20 }
 0x270   :  { %2436 = vpow2.f32 %v972_v23  ;;  %2190 = vmatprep.mubr.msk.bf16.mxu1 %vm2543_vm1, %v3601_v2 }
 0x271   :  { %v866_v1 = vpop.xlane.xlu0 %865  ;;  %2438 = vpow2.f32 %v970_v60 }
 0x272   :  { %v3119_v7 = vpop.eup %2432  ;;  %v934_v33 = vsub.f32 %v2967_v37, %v866_v1  ;;  %v2074_v37 = vpop.f32.mrb[33].mxu1 }
 0x273   :  { %v869_v19 = vpop.xlane.xlu1 %868  ;;  %v3122_v24 = vpop.eup %2434 }
 0x274   :  { %v935_v11 = vsub.f32 %v2971_v40, %v869_v19  ;;  %v1017_v14 = vpack.c.bf16 %v3119_v7, %v3122_v24  ;;  %v974_v18 = vmul.f32 1.442695, %v934_v33  ;;  %v3132_v17 = vpop.f32.mrb[34].mxu1 }
 0x275   :  { %v2075_v44 = vpop.f32.mrb[35].mxu1 }
 0x276   :  { %v976_v32 = vmul.f32 1.442695, %v935_v11  ;;  %v3143_v33 = vpop.f32.mrb[36].mxu1 }
 0x277   :  { %2191 = vmatmul.mubr.msk.bf16.gmra.mrb[72].mxu1 %vm833_vm2, %v1017_v14 }
 0x278   :  { %2440 = vpow2.f32 %v976_v32  ;;  %2194 = vmatprep.mubr.msk.bf16.mxu1 %vm2543_vm1, %v3601_v2 }
 0x279   :  { %v872_v6 = vpop.xlane.xlu0 %871  ;;  %2442 = vpow2.f32 %v974_v18 }
 0x27a   :  { %v3134_v13 = vpop.eup %2436  ;;  %v936_v40 = vsub.f32 %v2975_v43, %v872_v6  ;;  %v2078_v43 = vpop.f32.mrb[37].mxu1 }
 0x27b   :  { %v875_v51 = vpop.xlane.xlu1 %874  ;;  %v3137_v20 = vpop.eup %2438 }
 0x27c   :  { %v937_v60 = vsub.f32 %v2979_v46, %v875_v51  ;;  %v1018_v23 = vpack.c.bf16 %v3134_v13, %v3137_v20  ;;  %v978_v29 = vmul.f32 1.442695, %v936_v40  ;;  %v3147_v19 = vpop.f32.mrb[38].mxu1 }
 0x27d   :  { %3603 = vst [vmem:[#allocation2_spill] sm:$0xff] %v3147_v19  ;;  %v2079_v14 = vpop.f32.mrb[39].mxu1 }
 0x27e   :  { %v980_v1 = vmul.f32 1.442695, %v937_v60  ;;  %v3158_v51 = vpop.f32.mrb[40].mxu1 }
 0x27f   :  { %2195 = vmatmul.mubr.msk.bf16.gmra.mrb[76].mxu1 %vm833_vm2, %v1018_v23  ;;  %3604 = vst [vmem:[#allocation3_spill] sm:$0xff] %v3158_v51 }
 0x280   :  { %2444 = vpow2.f32 %v980_v1  ;;  %2198 = vmatprep.mubr.msk.bf16.mxu1 %vm2543_vm1, %v3601_v2 }
 0x281   :  { %v878_v9 = vpop.xlane.xlu0 %877  ;;  %2446 = vpow2.f32 %v978_v29 }
 0x282   :  { %v3149_v11 = vpop.eup %2440  ;;  %v938_v46 = vsub.f32 %v2983_v49, %v878_v9  ;;  %v2082_v49 = vpop.f32.mrb[41].mxu1 }
 0x283   :  { %v881_v18 = vpop.xlane.xlu1 %880  ;;  %v3152_v32 = vpop.eup %2442 }
 0x284   :  { %v939_v37 = vsub.f32 %v2987_v52, %v881_v18  ;;  %v1019_v6 = vpack.c.bf16 %v3149_v11, %v3152_v32  ;;  %v982_v40 = vmul.f32 1.442695, %v938_v46  ;;  %v3162_v23 = vpop.f32.mrb[42].mxu1 }
 0x285   :  { %3605 = vst [vmem:[#allocation4_spill] sm:$0xff] %v3162_v23  ;;  %v2083_v1 = vpop.f32.mrb[43].mxu1 }
 0x286   :  { %v984_v44 = vmul.f32 1.442695, %v939_v37 }
 0x287   :  { %2199 = vmatmul.mubr.msk.bf16.gmra.mrb[80].mxu1 %vm833_vm2, %v1019_v6  ;;  %v3173_v6 = vpop.f32.mrb[44].mxu1 }
 0x288   :  { %2448 = vpow2.f32 %v984_v44  ;;  %2202 = vmatprep.mubr.msk.bf16.mxu1 %vm2543_vm1, %v3601_v2  ;;  %3606 = vst [vmem:[#allocation5_spill] sm:$0xff] %v3173_v6 }
 0x289   :  { %v884_v60 = vpop.xlane.xlu0 %883  ;;  %2450 = vpow2.f32 %v982_v40 }
 0x28a   :  { %v3164_v29 = vpop.eup %2444  ;;  %v940_v52 = vsub.f32 %v2991_v55, %v884_v60  ;;  %v2086_v55 = vpop.f32.mrb[45].mxu1 }
 0x28b   :  { %v887_v43 = vpop.xlane.xlu1 %886  ;;  %v3167_v9 = vpop.eup %2446 }
 0x28c   :  { %v941_v46 = vsub.f32 %v2995_v58, %v887_v43  ;;  %v1020_v14 = vpack.c.bf16 %v3164_v29, %v3167_v9  ;;  %v986_v18 = vmul.f32 1.442695, %v940_v52  ;;  %v3177_v44 = vpop.f32.mrb[46].mxu1 }
 0x28d   :  { %3607 = vst [vmem:[#allocation6_spill] sm:$0xff] %v3177_v44  ;;  %v2087_v60 = vpop.f32.mrb[47].mxu1 }
 0x28e   :  { %v988_v37 = vmul.f32 1.442695, %v941_v46  ;;  %v3188_v55 = vpop.f32.mrb[48].mxu1 }
 0x28f   :  { %2203 = vmatmul.mubr.msk.bf16.gmra.mrb[84].mxu1 %vm833_vm2, %v1020_v14  ;;  %3608 = vst [vmem:[#allocation7_spill] sm:$0xff] %v3188_v55 }
 0x290   :  { %2452 = vpow2.f32 %v988_v37  ;;  %2206 = vmatprep.mubr.msk.bf16.mxu1 %vm2543_vm1, %v3601_v2 }
 0x291   :  { %v890_v40 = vpop.xlane.xlu0 %889  ;;  %2454 = vpow2.f32 %v986_v18 }
 0x292   :  { %v3179_v49 = vpop.eup %2448  ;;  %v942_v58 = vsub.f32 %v2999_v61, %v890_v40  ;;  %v2090_v61 = vpop.f32.mrb[49].mxu1 }
 0x293   :  { %v893_v52 = vpop.xlane.xlu1 %892  ;;  %v3182_v1 = vpop.eup %2450 }
 0x294   :  { %v943_v43 = vsub.f32 %v3003_v0, %v893_v52  ;;  %v1021_v46 = vpack.c.bf16 %v3179_v49, %v3182_v1  ;;  %v990_v14 = vmul.f32 1.442695, %v942_v58  ;;  %v3192_v40 = vpop.f32.mrb[50].mxu1 }
 0x295   :  { %3609 = vst [vmem:[#allocation8_spill] sm:$0xff] %v3192_v40  ;;  %v2091_v52 = vpop.f32.mrb[51].mxu1  ;;  %v3611_v40 = vmov 0.0  }
 0x296   :  { %v992_v37 = vmul.f32 1.442695, %v943_v43  ;;  %v3203_v61 = vpop.f32.mrb[52].mxu1 }
 0x297   :  { %2207 = vmatmul.mubr.msk.bf16.gmra.mrb[88].mxu1 %vm833_vm2, %v1021_v46  ;;  %3610 = vst [vmem:[#allocation9_spill] sm:$0xff] %v3203_v61 }
 0x298   :  { %2456 = vpow2.f32 %v992_v37  ;;  %2210 = vmatprep.mubr.msk.bf16.mxu1 %vm2543_vm1, %v3601_v2 }
 0x299   :  { %v896_v18 = vpop.xlane.xlu0 %895  ;;  %2458 = vpow2.f32 %v990_v14 }
 0x29a   :  { %v3194_v60 = vpop.eup %2452  ;;  %v944_v0 = vsub.f32 %v3007_v34, %v896_v18  ;;  %v2094_v34 = vpop.f32.mrb[53].mxu1 }
 0x29b   :  { %v899_v58 = vpop.xlane.xlu1 %898  ;;  %v3197_v43 = vpop.eup %2454 }
 0x29c   :  { %v945_v46 = vsub.f32 %v3011_v10, %v899_v58  ;;  %v1022_v37 = vpack.c.bf16 %v3194_v60, %v3197_v43  ;;  %v994_v55 = vmul.f32 1.442695, %v944_v0  ;;  %v3207_v18 = vpop.f32.mrb[54].mxu1 }
 0x29d   :  { %3612 = vst [vmem:[#allocation10_spill] sm:$0xff] %v3207_v18  ;;  %v2095_v58 = vpop.f32.mrb[55].mxu1 }
 0x29e   :  { %v996_v2 = vmul.f32 1.442695, %v945_v46  ;;  %v3218_v34 = vpop.f32.mrb[56].mxu1 }
 0x29f   :  { %2211 = vmatmul.mubr.msk.bf16.gmra.mrb[92].mxu1 %vm833_vm2, %v1022_v37  ;;  %3613 = vst [vmem:[#allocation11_spill] sm:$0xff] %v3218_v34 }
 0x2a0   :  { %2460 = vpow2.f32 %v996_v2  ;;  %2214 = vmatprep.mubr.msk.bf16.mxu1 %vm2543_vm1, %v3611_v40 }
 0x2a1   :  { %v902_v14 = vpop.xlane.xlu0 %901  ;;  %2462 = vpow2.f32 %v994_v55 }
 0x2a2   :  { %v3209_v52 = vpop.eup %2456  ;;  %v946_v10 = vsub.f32 %v3015_v21, %v902_v14  ;;  %v2098_v21 = vpop.f32.mrb[57].mxu1 }
 0x2a3   :  { %v905_v0 = vpop.xlane.xlu1 %904  ;;  %v3212_v46 = vpop.eup %2458 }
 0x2a4   :  { %v947_v37 = vsub.f32 %v3019_v25, %v905_v0  ;;  %v1023_v2 = vpack.c.bf16 %v3209_v52, %v3212_v46  ;;  %v998_v61 = vmul.f32 1.442695, %v946_v10  ;;  %v3222_v14 = vpop.f32.mrb[58].mxu1 }
 0x2a5   :  { %3614 = vst [vmem:[#allocation12_spill] sm:$0xff] %v3222_v14  ;;  %v2099_v0 = vpop.f32.mrb[59].mxu1  ;;  %v2414_v14 = vld [vmem:[%s3599_s6 + $0x10] sm:$0xff]  }
 0x2a6   :  { %v1000_v44 = vmul.f32 1.442695, %v947_v37 }
 0x2a7   :  { %2215 = vmatmul.mubr.msk.bf16.gmra.mrb[96].mxu1 %vm833_vm2, %v1023_v2 }
 0x2a8   :  { %2464 = vpow2.f32 %v1000_v44  ;;  %2218 = vmatprep.mubr.msk.bf16.mxu1 %vm2543_vm1, %v3611_v40 }
 0x2a9   :  { %v908_v55 = vpop.xlane.xlu0 %907  ;;  %2466 = vpow2.f32 %v998_v61 }
 0x2aa   :  { %v3224_v58 = vpop.eup %2460  ;;  %v948_v25 = vsub.f32 %v3023_v26, %v908_v55 }
 0x2ab   :  { %v911_v10 = vpop.xlane.xlu1 %910  ;;  %v3227_v37 = vpop.eup %2462 }
 0x2ac   :  { %v949_v2 = vsub.f32 %v3027_v15, %v911_v10  ;;  %v1024_v44 = vpack.c.bf16 %v3224_v58, %v3227_v37  ;;  %v1002_v34 = vmul.f32 1.442695, %v948_v25 }
 0x2ae   :  { %v1004_v18 = vmul.f32 1.442695, %v949_v2 }
 0x2af   :  { %2219 = vmatmul.mubr.msk.bf16.gmra.mrb[100].mxu1 %vm833_vm2, %v1024_v44 }
 0x2b0   :  { %2468 = vpow2.f32 %v1004_v18  ;;  %2222 = vmatprep.mubr.msk.bf16.mxu1 %vm2543_vm1, %v3611_v40 }
 0x2b1   :  { %v914_v61 = vpop.xlane.xlu0 %913  ;;  %2470 = vpow2.f32 %v1002_v34 }
 0x2b2   :  { %v3235_v21 = vpop.eup %2464  ;;  %v950_v26 = vsub.f32 %v3031_v31, %v914_v61 }
 0x2b3   :  { %v917_v55 = vpop.xlane.xlu1 %916  ;;  %v3238_v0 = vpop.eup %2466 }
 0x2b4   :  { %v951_v15 = vsub.f32 %v3035_v28, %v917_v55  ;;  %v1025_v25 = vpack.c.bf16 %v3235_v21, %v3238_v0  ;;  %v1006_v10 = vmul.f32 1.442695, %v950_v26 }
 0x2b6   :  { %v1008_v2 = vmul.f32 1.442695, %v951_v15 }
 0x2b7   :  { %2223 = vmatmul.mubr.msk.bf16.gmra.mrb[104].mxu1 %vm833_vm2, %v1025_v25 }
 0x2b8   :  { %2472 = vpow2.f32 %v1008_v2  ;;  %2226 = vmatprep.mubr.msk.bf16.mxu1 %vm2543_vm1, %v3611_v40 }
 0x2b9   :  { %v920_v18 = vpop.xlane.xlu0 %919  ;;  %2474 = vpow2.f32 %v1006_v10 }
 0x2ba   :  { %v3246_v34 = vpop.eup %2468  ;;  %v952_v31 = vsub.f32 %v3039_v41, %v920_v18 }
 0x2bb   :  { %v923_v44 = vpop.xlane.xlu1 %922  ;;  %v3249_v61 = vpop.eup %2470 }
 0x2bc   :  { %v953_v28 = vsub.f32 %v3043_v45, %v923_v44  ;;  %v1026_v26 = vpack.c.bf16 %v3246_v34, %v3249_v61  ;;  %v1010_v55 = vmul.f32 1.442695, %v952_v31  ;;  %v2412_v31 = vld [vmem:[%s3599_s6] sm:$0xff]  }
 0x2bd   :  { %2301 = vmatpush3.bf16.msra.mxu1 %v2412_v31 }
 0x2be   :  { %v1012_v15 = vmul.f32 1.442695, %v953_v28  ;;  %2302 = vmatprep.subr.bf16.mxu1 %v3611_v40 }
 0x2bf   :  { %2227 = vmatmul.mubr.msk.bf16.gmra.mrb[108].mxu1 %vm833_vm2, %v1026_v26 }
 0x2c0   :  { %2476 = vpow2.f32 %v1012_v15  ;;  %2230 = vmatprep.mubr.msk.bf16.mxu1 %vm2543_vm1, %v3611_v40 }
 0x2c1   :  { %2478 = vpow2.f32 %v1010_v55 }
 0x2c2   :  { %v3257_v25 = vpop.eup %2472 }
 0x2c3   :  { %v3259_v41 = vpop.eup %2474 }
 0x2c4   :  { %v1027_v10 = vpack.c.bf16 %v3257_v25, %v3259_v41 }
 0x2c7   :  { %2231 = vmatmul.mubr.msk.bf16.gmra.mrb[112].mxu1 %vm833_vm2, %v1027_v10 }
 0x2c8   :  { %2234 = vmatprep.mubr.msk.bf16.mxu1 %vm2543_vm1, %v3611_v40 }
 0x2ca   :  { %v3266_v45 = vpop.eup %2476 }
 0x2cb   :  { %v3268_v2 = vpop.eup %2478 }
 0x2cc   :  { %v1028_v18 = vpack.c.bf16 %v3266_v45, %v3268_v2 }
 0x2cf   :  { %2235 = vmatmul.mubr.msk.bf16.gmra.mrb[116].mxu1 %vm833_vm2, %v1028_v18  ;;  %v2413_v18 = vld [vmem:[%s3599_s6 + $0x8] sm:$0xff]  }
 0x2d0   :  { %2316 = vmatprep.mubr.msk.bf16.mxu1 %vm2543_vm1, %v3611_v40  ;;  %2303 = vmatpush3.bf16.msra.mxu1 %v2413_v18  ;;  %v2416_v18 = vld [vmem:[%s3599_s6 + $0x20] sm:$0xff]  }
 0x2d1   :  { %2304 = vmatprep.subr.bf16.mxu1 %v3611_v40 }
 0x2d4   :  { %2305 = vmatpush3.bf16.msra.mxu1 %v2414_v14 }
 0x2d5   :  { %2306 = vmatprep.subr.bf16.mxu1 %v3611_v40 }
 0x332   :  { %v1116_v44 = vpop.f32.mrb[60].mxu1 }
 0x333   :  { %v1235_v28 = vmax.f32 %v1116_v44, 1e-30  ;;  %v2180_v26 = vpop.f32.mrb[61].mxu1 }
 0x334   :  { %v1119_v55 = vpop.f32.mrb[62].mxu1 }
 0x335   :  { %2480 = vrcp.f32 %v1235_v28  ;;  %v1236_v15 = vmax.f32 %v1119_v55, 1e-30  ;;  %v2181_v10 = vpop.f32.mrb[63].mxu1  ;;  %v2415_v28 = vld [vmem:[%s3599_s6 + $0x18] sm:$0xff]  }
 0x336   :  { %2307 = vmatpush3.bf16.msra.mxu1 %v2415_v28  ;;  %v2417_v28 = vld [vmem:[%s3599_s6 + $0x28] sm:$0xff]  }
 0x337   :  { %2482 = vrcp.f32 %v1236_v15  ;;  %2308 = vmatprep.subr.bf16.mxu1 %v3611_v40 }
 0x33a   :  { %v1124_v31 = vpop.f32.mrb[64].mxu1  ;;  %2309 = vmatpush3.bf16.msra.mxu1 %v2416_v18 }
 0x33b   :  { %v1237_v6 = vmax.f32 %v1124_v31, 1e-30  ;;  %v2184_v44 = vpop.f32.mrb[65].mxu1  ;;  %2310 = vmatprep.subr.bf16.mxu1 %v3611_v40 }
 0x33c   :  { %v1127_v26 = vpop.f32.mrb[66].mxu1 }
 0x33d   :  { %2484 = vrcp.f32 %v1237_v6  ;;  %v1238_v55 = vmax.f32 %v1127_v26, 1e-30  ;;  %v2185_v10 = vpop.f32.mrb[67].mxu1 }
 0x33e   :  { %2311 = vmatpush3.bf16.msra.mxu1 %v2417_v28 }
 0x33f   :  { %v2481_v15 = vpop.eup %2480  ;;  %2486 = vrcp.f32 %v1238_v55  ;;  %2312 = vmatprep.subr.bf16.mxu1 %v3611_v40 }
 0x340   :  { %v1295_v14 = vmul.f32 %v2481_v15, %v3075_v54 }
 0x341   :  { %v2483_v31 = vpop.eup %2482 }
 0x342   :  { %v1296_v44 = vmul.f32 %v2483_v31, %v3077_v57  ;;  %v1132_v23 = vpop.f32.mrb[68].mxu1  ;;  %v2418_v57 = vld [vmem:[%s3599_s6 + $0x30] sm:$0xff]  }
 0x343   :  { %v1239_v6 = vmax.f32 %v1132_v23, 1e-30  ;;  %v2188_v26 = vpop.f32.mrb[69].mxu1  ;;  %2313 = vmatpush3.bf16.msra.mxu1 %v2418_v57 }
 0x344   :  { %v1325_v10 = vpack.c.bf16 %v1296_v44, %v1295_v14  ;;  %v1135_v51 = vpop.f32.mrb[70].mxu1  ;;  %2314 = vmatprep.subr.bf16.mxu1 %v3611_v40 }
 0x345   :  { %2488 = vrcp.f32 %v1239_v6  ;;  %v1240_v55 = vmax.f32 %v1135_v51, 1e-30  ;;  %v2189_v19 = vpop.f32.mrb[71].mxu1  ;;  %v2419_v6 = vld [vmem:[%s3599_s6 + $0x38] sm:$0xff]  }
 0x346   :  { %2241 = vmatmul.mubr.msk.bf16.vlgmr.msra.gmra.mrb[120].mxu0 %vm833_vm2, %v1325_v10 }
 0x347   :  { %v2485_v54 = vpop.eup %2484  ;;  %2490 = vrcp.f32 %v1240_v55  ;;  %2244 = vmatprep.mubr.msk.bf16.mxu0 %vm2543_vm1, %v3611_v40  ;;  %2315 = vmatpush3.bf16.msra.mxu1 %v2419_v6 }
 0x348   :  { %v1297_v19 = vmul.f32 %v2485_v54, %v3090_v22 }
 0x349   :  { %v2487_v23 = vpop.eup %2486 }
 0x34a   :  { %v1140_v15 = vpop.f32.mrb[72].mxu1  ;;  %v1298_v51 = vmul.f32 %v2487_v23, %v3092_v8 }
 0x34b   :  { %v1241_v18 = vmax.f32 %v1140_v15, 1e-30  ;;  %v2192_v31 = vpop.f32.mrb[73].mxu1 }
 0x34c   :  { %v1143_v14 = vpop.f32.mrb[74].mxu1  ;;  %v1326_v44 = vpack.c.bf16 %v1298_v51, %v1297_v19 }
 0x34d   :  { %2492 = vrcp.f32 %v1241_v18  ;;  %v1242_v26 = vmax.f32 %v1143_v14, 1e-30  ;;  %v2193_v10 = vpop.f32.mrb[75].mxu1 }
 0x34e   :  { %2245 = vmatmul.mubr.msk.bf16.gmra.mrb[124].mxu0 %vm833_vm2, %v1326_v44 }
 0x34f   :  { %v2489_v28 = vpop.eup %2488  ;;  %2494 = vrcp.f32 %v1242_v26  ;;  %2248 = vmatprep.mubr.msk.bf16.mxu0 %vm2543_vm1, %v3611_v40 }
 0x350   :  { %v1299_v55 = vmul.f32 %v2489_v28, %v3107_v48 }
 0x351   :  { %v2491_v22 = vpop.eup %2490 }
 0x352   :  { %v1148_v8 = vpop.f32.mrb[76].mxu1  ;;  %v1300_v54 = vmul.f32 %v2491_v22, %v3104_v42 }
 0x353   :  { %v1243_v57 = vmax.f32 %v1148_v8, 1e-30  ;;  %v2196_v23 = vpop.f32.mrb[77].mxu1 }
 0x354   :  { %v1151_v15 = vpop.f32.mrb[78].mxu1  ;;  %v1327_v19 = vpack.c.bf16 %v1300_v54, %v1299_v55 }
 0x355   :  { %2496 = vrcp.f32 %v1243_v57  ;;  %v1244_v51 = vmax.f32 %v1151_v15, 1e-30  ;;  %v2197_v18 = vpop.f32.mrb[79].mxu1 }
 0x356   :  { %2249 = vmatmul.mubr.msk.bf16.gmra.mrb[128].mxu0 %vm833_vm2, %v1327_v19 }
 0x357   :  { %v2493_v31 = vpop.eup %2492  ;;  %2498 = vrcp.f32 %v1244_v51  ;;  %2252 = vmatprep.mubr.msk.bf16.mxu0 %vm2543_vm1, %v3611_v40 }
 0x358   :  { %v1301_v48 = vmul.f32 %v2493_v31, %v3122_v24 }
 0x359   :  { %v2495_v14 = vpop.eup %2494 }
 0x35a   :  { %v1156_v44 = vpop.f32.mrb[80].mxu1  ;;  %v1302_v42 = vmul.f32 %v2495_v14, %v3119_v7 }
 0x35b   :  { %v1245_v6 = vmax.f32 %v1156_v44, 1e-30  ;;  %v2200_v26 = vpop.f32.mrb[81].mxu1 }
 0x35c   :  { %v1159_v10 = vpop.f32.mrb[82].mxu1  ;;  %v1328_v28 = vpack.c.bf16 %v1302_v42, %v1301_v48 }
 0x35d   :  { %2500 = vrcp.f32 %v1245_v6  ;;  %v1246_v22 = vmax.f32 %v1159_v10, 1e-30  ;;  %v2201_v8 = vpop.f32.mrb[83].mxu1 }
 0x35e   :  { %2253 = vmatmul.mubr.msk.bf16.gmra.mrb[132].mxu0 %vm833_vm2, %v1328_v28 }
 0x35f   :  { %v2497_v55 = vpop.eup %2496  ;;  %2502 = vrcp.f32 %v1246_v22  ;;  %2256 = vmatprep.mubr.msk.bf16.mxu0 %vm2543_vm1, %v3611_v40 }
 0x360   :  { %v1303_v24 = vmul.f32 %v2497_v55, %v3137_v20 }
 0x361   :  { %v2499_v54 = vpop.eup %2498 }
 0x362   :  { %v1164_v57 = vpop.f32.mrb[84].mxu1  ;;  %v1304_v7 = vmul.f32 %v2499_v54, %v3134_v13 }
 0x363   :  { %v1247_v23 = vmax.f32 %v1164_v57, 1e-30  ;;  %v2204_v15 = vpop.f32.mrb[85].mxu1 }
 0x364   :  { %v1167_v19 = vpop.f32.mrb[86].mxu1  ;;  %v1329_v51 = vpack.c.bf16 %v1304_v7, %v1303_v24 }
 0x365   :  { %2504 = vrcp.f32 %v1247_v23  ;;  %v1248_v18 = vmax.f32 %v1167_v19, 1e-30  ;;  %v2205_v31 = vpop.f32.mrb[87].mxu1 }
 0x366   :  { %2257 = vmatmul.mubr.msk.bf16.gmra.mrb[136].mxu0 %vm833_vm2, %v1329_v51 }
 0x367   :  { %v2501_v14 = vpop.eup %2500  ;;  %2506 = vrcp.f32 %v1248_v18  ;;  %2260 = vmatprep.mubr.msk.bf16.mxu0 %vm2543_vm1, %v3611_v40 }
 0x368   :  { %v1305_v20 = vmul.f32 %v2501_v14, %v3152_v32 }
 0x369   :  { %v2503_v44 = vpop.eup %2502 }
 0x36a   :  { %v1172_v48 = vpop.f32.mrb[88].mxu1  ;;  %v1306_v13 = vmul.f32 %v2503_v44, %v3149_v11 }
 0x36b   :  { %v1249_v42 = vmax.f32 %v1172_v48, 1e-30  ;;  %v2208_v6 = vpop.f32.mrb[89].mxu1 }
 0x36c   :  { %v1175_v26 = vpop.f32.mrb[90].mxu1  ;;  %v1330_v10 = vpack.c.bf16 %v1306_v13, %v1305_v20 }
 0x36d   :  { %2508 = vrcp.f32 %v1249_v42  ;;  %v1250_v28 = vmax.f32 %v1175_v26, 1e-30  ;;  %v2209_v22 = vpop.f32.mrb[91].mxu1 }
 0x36e   :  { %2261 = vmatmul.mubr.msk.bf16.gmra.mrb[140].mxu0 %vm833_vm2, %v1330_v10 }
 0x36f   :  { %v2505_v8 = vpop.eup %2504  ;;  %2510 = vrcp.f32 %v1250_v28  ;;  %2264 = vmatprep.mubr.msk.bf16.mxu0 %vm2543_vm1, %v3611_v40 }
 0x370   :  { %v1307_v32 = vmul.f32 %v2505_v8, %v3167_v9 }
 0x371   :  { %v2507_v55 = vpop.eup %2506 }
 0x372   :  { %v1180_v54 = vpop.f32.mrb[92].mxu1  ;;  %v1308_v11 = vmul.f32 %v2507_v55, %v3164_v29 }
 0x373   :  { %v1251_v57 = vmax.f32 %v1180_v54, 1e-30  ;;  %v2212_v24 = vpop.f32.mrb[93].mxu1 }
 0x374   :  { %v1183_v7 = vpop.f32.mrb[94].mxu1  ;;  %v1331_v23 = vpack.c.bf16 %v1308_v11, %v1307_v32 }
 0x375   :  { %2512 = vrcp.f32 %v1251_v57  ;;  %v1252_v15 = vmax.f32 %v1183_v7, 1e-30  ;;  %v2213_v19 = vpop.f32.mrb[95].mxu1 }
 0x376   :  { %2265 = vmatmul.mubr.msk.bf16.gmra.mrb[144].mxu0 %vm833_vm2, %v1331_v23 }
 0x377   :  { %v2509_v51 = vpop.eup %2508  ;;  %2514 = vrcp.f32 %v1252_v15  ;;  %2268 = vmatprep.mubr.msk.bf16.mxu0 %vm2543_vm1, %v3611_v40 }
 0x378   :  { %v1309_v9 = vmul.f32 %v2509_v51, %v3182_v1 }
 0x379   :  { %v2511_v18 = vpop.eup %2510 }
 0x37a   :  { %v1188_v31 = vpop.f32.mrb[96].mxu1  ;;  %v1310_v29 = vmul.f32 %v2511_v18, %v3179_v49 }
 0x37b   :  { %v1253_v14 = vmax.f32 %v1188_v31, 1e-30  ;;  %v2216_v44 = vpop.f32.mrb[97].mxu1 }
 0x37c   :  { %v1191_v48 = vpop.f32.mrb[98].mxu1  ;;  %v1332_v20 = vpack.c.bf16 %v1310_v29, %v1309_v9 }
 0x37d   :  { %2516 = vrcp.f32 %v1253_v14  ;;  %v1254_v13 = vmax.f32 %v1191_v48, 1e-30  ;;  %v2217_v42 = vpop.f32.mrb[99].mxu1 }
 0x37e   :  { %2269 = vmatmul.mubr.msk.bf16.gmra.mrb[148].mxu0 %vm833_vm2, %v1332_v20 }
 0x37f   :  { %v2513_v6 = vpop.eup %2512  ;;  %2518 = vrcp.f32 %v1254_v13  ;;  %2272 = vmatprep.mubr.msk.bf16.mxu0 %vm2543_vm1, %v3611_v40 }
 0x380   :  { %v1311_v1 = vmul.f32 %v2513_v6, %v3197_v43 }
 0x381   :  { %v2515_v26 = vpop.eup %2514 }
 0x382   :  { %v1196_v10 = vpop.f32.mrb[100].mxu1  ;;  %v1312_v49 = vmul.f32 %v2515_v26, %v3194_v60 }
 0x383   :  { %v1255_v28 = vmax.f32 %v1196_v10, 1e-30  ;;  %v2220_v22 = vpop.f32.mrb[101].mxu1 }
 0x384   :  { %v1199_v8 = vpop.f32.mrb[102].mxu1  ;;  %v1333_v55 = vpack.c.bf16 %v1312_v49, %v1311_v1 }
 0x385   :  { %2520 = vrcp.f32 %v1255_v28  ;;  %v1256_v54 = vmax.f32 %v1199_v8, 1e-30  ;;  %v2221_v32 = vpop.f32.mrb[103].mxu1 }
 0x386   :  { %2273 = vmatmul.mubr.msk.bf16.gmra.mrb[152].mxu0 %vm833_vm2, %v1333_v55 }
 0x387   :  { %v2517_v11 = vpop.eup %2516  ;;  %2522 = vrcp.f32 %v1256_v54  ;;  %2276 = vmatprep.mubr.msk.bf16.mxu0 %vm2543_vm1, %v3611_v40 }
 0x388   :  { %v1313_v43 = vmul.f32 %v2517_v11, %v3212_v46 }
 0x389   :  { %v2519_v57 = vpop.eup %2518 }
 0x38a   :  { %v1204_v24 = vpop.f32.mrb[104].mxu1  ;;  %v1314_v60 = vmul.f32 %v2519_v57, %v3209_v52 }
 0x38b   :  { %v1257_v7 = vmax.f32 %v1204_v24, 1e-30  ;;  %v2224_v23 = vpop.f32.mrb[105].mxu1 }
 0x38c   :  { %v1207_v15 = vpop.f32.mrb[106].mxu1  ;;  %v1334_v19 = vpack.c.bf16 %v1314_v60, %v1313_v43 }
 0x38d   :  { %2524 = vrcp.f32 %v1257_v7  ;;  %v1258_v51 = vmax.f32 %v1207_v15, 1e-30  ;;  %v2225_v18 = vpop.f32.mrb[107].mxu1 }
 0x38e   :  { %2277 = vmatmul.mubr.msk.bf16.gmra.mrb[156].mxu0 %vm833_vm2, %v1334_v19 }
 0x38f   :  { %v2521_v31 = vpop.eup %2520  ;;  %2526 = vrcp.f32 %v1258_v51  ;;  %2280 = vmatprep.mubr.msk.bf16.mxu0 %vm2543_vm1, %v3611_v40 }
 0x390   :  { %v1315_v46 = vmul.f32 %v2521_v31, %v3227_v37 }
 0x391   :  { %v2523_v9 = vpop.eup %2522 }
 0x392   :  { %v1212_v29 = vpop.f32.mrb[108].mxu1  ;;  %v1316_v52 = vmul.f32 %v2523_v9, %v3224_v58 }
 0x393   :  { %v1259_v14 = vmax.f32 %v1212_v29, 1e-30  ;;  %v2228_v44 = vpop.f32.mrb[109].mxu1 }
 0x394   :  { %v1215_v48 = vpop.f32.mrb[110].mxu1  ;;  %v1335_v20 = vpack.c.bf16 %v1316_v52, %v1315_v46  ;;  %v77_v52 = vsub.s32 2, %v2754_v30 }
 0x395   :  { %2528 = vrcp.f32 %v1259_v14  ;;  %v1260_v13 = vmax.f32 %v1215_v48, 1e-30  ;;  %v2229_v42 = vpop.f32.mrb[111].mxu1 }
 0x396   :  { %2281 = vmatmul.mubr.msk.bf16.gmra.mrb[160].mxu0 %vm833_vm2, %v1335_v20 }
 0x397   :  { %v2525_v6 = vpop.eup %2524  ;;  %2530 = vrcp.f32 %v1260_v13  ;;  %2284 = vmatprep.mubr.msk.bf16.mxu0 %vm2543_vm1, %v3611_v40 }
 0x398   :  { %v1317_v37 = vmul.f32 %v2525_v6, %v3238_v0 }
 0x399   :  { %v2527_v26 = vpop.eup %2526 }
 0x39a   :  { %v1220_v10 = vpop.f32.mrb[112].mxu1  ;;  %v1318_v58 = vmul.f32 %v2527_v26, %v3235_v21 }
 0x39b   :  { %v1261_v1 = vmax.f32 %v1220_v10, 1e-30  ;;  %v2232_v49 = vpop.f32.mrb[113].mxu1 }
 0x39c   :  { %v1223_v28 = vpop.f32.mrb[114].mxu1  ;;  %v1336_v22 = vpack.c.bf16 %v1318_v58, %v1317_v37 }
 0x39d   :  { %2532 = vrcp.f32 %v1261_v1  ;;  %v1262_v8 = vmax.f32 %v1223_v28, 1e-30  ;;  %v2233_v55 = vpop.f32.mrb[115].mxu1 }
 0x39e   :  { %2285 = vmatmul.mubr.msk.bf16.gmra.mrb[164].mxu0 %vm833_vm2, %v1336_v22 }
 0x39f   :  { %v2529_v54 = vpop.eup %2528  ;;  %2534 = vrcp.f32 %v1262_v8  ;;  %2288 = vmatprep.mubr.msk.bf16.mxu0 %vm2543_vm1, %v3611_v40 }
 0x3a0   :  { %v1319_v0 = vmul.f32 %v2529_v54, %v3249_v61 }
 0x3a1   :  { %v2531_v32 = vpop.eup %2530 }
 0x3a2   :  { %v1228_v11 = vpop.f32.mrb[116].mxu1  ;;  %v1320_v21 = vmul.f32 %v2531_v32, %v3246_v34 }
 0x3a3   :  { %v1263_v57 = vmax.f32 %v1228_v11, 1e-30  ;;  %v2236_v24 = vpop.f32.mrb[117].mxu1 }
 0x3a4   :  { %v1231_v43 = vpop.f32.mrb[118].mxu1  ;;  %v1337_v60 = vpack.c.bf16 %v1320_v21, %v1319_v0 }
 0x3a5   :  { %2536 = vrcp.f32 %v1263_v57  ;;  %v1264_v7 = vmax.f32 %v1231_v43, 1e-30  ;;  %v2237_v23 = vpop.f32.mrb[119].mxu1 }
 0x3a6   :  { %2289 = vmatmul.mubr.msk.bf16.gmra.mrb[168].mxu0 %vm833_vm2, %v1337_v60 }
 0x3a7   :  { %v2533_v15 = vpop.eup %2532  ;;  %2538 = vrcp.f32 %v1264_v7  ;;  %2292 = vmatprep.mubr.msk.bf16.mxu0 %vm2543_vm1, %v3611_v40 }
 0x3a8   :  { %v1321_v51 = vmul.f32 %v2533_v15, %v3259_v41 }
 0x3a9   :  { %v2535_v19 = vpop.eup %2534 }
 0x3aa   :  { %v1322_v61 = vmul.f32 %v2535_v19, %v3257_v25  ;;  %v2540_v25 = vld [vmem:[%s3596_s2] sm:$0x7] }
 0x3ab   :  { %v3383_v41 = vrot.slane %v2540_v25, %v77_v52 }
 0x3ac   :  { %v1338_v34 = vpack.c.bf16 %v1322_v61, %v1321_v51 }
 0x3ad   :  { %v453_v14 = vadd.f32 %v3047_v50, %v3383_v41  ;;  %v461_v30 = vadd.f32 %v3051_v56, %v3383_v41  ;;  %v464_v50 = vadd.f32 %v3053_v59, %v3383_v41  ;;  %v469_v28 = vadd.f32 %v3055_v62, %v3383_v41 }
 0x3ae   :  { %2293 = vmatmul.mubr.msk.bf16.gmra.mrb[172].mxu0 %vm833_vm2, %v1338_v34  ;;  %v472_v56 = vadd.f32 %v3057_v3, %v3383_v41  ;;  %v477_v0 = vadd.f32 %v3064_v5, %v3383_v41  ;;  %v480_v62 = vadd.f32 %v3066_v27, %v3383_v41  ;;  %v485_v23 = vadd.f32 %v3070_v39, %v3383_v41 }
 0x3af   :  { %v2537_v18 = vpop.eup %2536  ;;  %2296 = vmatprep.mubr.msk.bf16.mxu0 %vm2543_vm1, %v3611_v40  ;;  %v488_v5 = vadd.f32 %v3072_v47, %v3383_v41  ;;  %v496_v39 = vadd.f32 %v3087_v16, %v3383_v41 }
 0x3b0   :  { %v1323_v9 = vmul.f32 %v2537_v18, %v3268_v2  ;;  %v456_v2 = vadd.f32 %v3049_v53, %v3383_v41 }
 0x3b1   :  { %v2539_v31 = vpop.eup %2538 }
 0x3b2   :  { %v1324_v29 = vmul.f32 %v2539_v31, %v3266_v45  ;;  %v493_v31 = vadd.f32 %v3083_v35, %v3383_v41  ;;  %v504_v35 = vadd.f32 %v3102_v38, %v3383_v41 }
 0x3b4   :  { %v1339_v46 = vpack.c.bf16 %v1324_v29, %v1323_v9 }
 0x3b6   :  { %2297 = vmatmul.mubr.msk.bf16.gmra.mrb[176].mxu0 %vm833_vm2, %v1339_v46 }
 0x419   :  { %v1427_v44 = vpop.f32.mrb[120].mxu0 }
 0x41a   :  { %v1546_v48 = vmul.f32 %v1427_v44, %v453_v14  ;;  %v2242_v45 = vpop.f32.mrb[121].mxu0  ;;  %v501_v44 = vadd.f32 %v3098_v36, %v3383_v41  ;;  %v512_v36 = vadd.f32 %v3117_v4, %v3383_v41 }
 0x41b   :  { %v1430_v20 = vpop.f32.mrb[122].mxu0 }
 0x41c   :  { %v1547_v13 = vmul.f32 %v1430_v20, %v456_v2  ;;  %v2243_v42 = vpop.f32.mrb[123].mxu0 }
 0x41e   :  { %v1576_v6 = vpack.c.bf16 %v1547_v13, %v1546_v48 }
 0x420   :  { %2317 = vmatmul.mubr.bf16.vlgmr.msra.gmra.mrb[120].mxu1 %v1576_v6  ;;  %v509_v6 = vadd.f32 %v3113_v63, %v3383_v41  ;;  %v520_v63 = vadd.f32 %v3132_v17, %v3383_v41 }
 0x421   :  { %v1435_v26 = vpop.f32.mrb[124].mxu0  ;;  %2320 = vmatprep.mubr.msk.bf16.mxu1 %vm2543_vm1, %v3611_v40 }
 0x422   :  { %v1548_v10 = vmul.f32 %v1435_v26, %v461_v30  ;;  %v2246_v37 = vpop.f32.mrb[125].mxu0 }
 0x423   :  { %v1438_v53 = vpop.f32.mrb[126].mxu0 }
 0x424   :  { %v1549_v58 = vmul.f32 %v1438_v53, %v464_v50  ;;  %v2247_v1 = vpop.f32.mrb[127].mxu0 }
 0x426   :  { %v1577_v49 = vpack.c.bf16 %v1549_v58, %v1548_v10  ;;  %v517_v58 = vadd.f32 %v3128_v12, %v3383_v41  ;;  %v3615_v12 = vld [vmem:[#allocation2_spill] sm:$0xff] }
 0x428   :  { %2321 = vmatmul.mubr.bf16.gmra.mrb[124].mxu1 %v1577_v49 }
 0x429   :  { %v1443_v22 = vpop.f32.mrb[128].mxu0  ;;  %2324 = vmatprep.mubr.msk.bf16.mxu1 %vm2543_vm1, %v3611_v40 }
 0x42a   :  { %v1550_v8 = vmul.f32 %v1443_v22, %v469_v28  ;;  %v2250_v55 = vpop.f32.mrb[129].mxu0 }
 0x42b   :  { %v1446_v59 = vpop.f32.mrb[130].mxu0  ;;  %v525_v55 = vadd.f32 %v3143_v33, %v3383_v41  ;;  %v3617_v33 = vld [vmem:[#allocation4_spill] sm:$0xff] }
 0x42c   :  { %v1551_v54 = vmul.f32 %v1446_v59, %v472_v56  ;;  %v2251_v32 = vpop.f32.mrb[131].mxu0 }
 0x42e   :  { %v1578_v11 = vpack.c.bf16 %v1551_v54, %v1550_v8  ;;  %v528_v54 = vadd.f32 %v3615_v12, %v3383_v41 }
 0x430   :  { %2325 = vmatmul.mubr.bf16.gmra.mrb[128].mxu1 %v1578_v11 }
 0x431   :  { %v1451_v21 = vpop.f32.mrb[132].mxu0  ;;  %2328 = vmatprep.mubr.msk.bf16.mxu1 %vm2543_vm1, %v3611_v40 }
 0x432   :  { %v1552_v57 = vmul.f32 %v1451_v21, %v477_v0  ;;  %v2254_v24 = vpop.f32.mrb[133].mxu0 }
 0x433   :  { %v1454_v3 = vpop.f32.mrb[134].mxu0 }
 0x434   :  { %v1553_v43 = vmul.f32 %v1454_v3, %v480_v62  ;;  %v2255_v60 = vpop.f32.mrb[135].mxu0 }
 0x436   :  { %v1579_v7 = vpack.c.bf16 %v1553_v43, %v1552_v57  ;;  %v3616_v57 = vld [vmem:[#allocation3_spill] sm:$0xff]  ;;  %v536_v43 = vadd.f32 %v3617_v33, %v3383_v41 }
 0x437   :  { %v533_v24 = vadd.f32 %v3616_v57, %v3383_v41 }
 0x438   :  { %2329 = vmatmul.mubr.bf16.gmra.mrb[132].mxu1 %v1579_v7 }
 0x439   :  { %v1459_v15 = vpop.f32.mrb[136].mxu0  ;;  %2332 = vmatprep.mubr.msk.bf16.mxu1 %vm2543_vm1, %v3611_v40 }
 0x43a   :  { %v1554_v19 = vmul.f32 %v1459_v15, %v485_v23  ;;  %v2258_v51 = vpop.f32.mrb[137].mxu0 }
 0x43b   :  { %v1462_v27 = vpop.f32.mrb[138].mxu0  ;;  %v3618_v51 = vld [vmem:[#allocation5_spill] sm:$0xff] }
 0x43c   :  { %v1555_v61 = vmul.f32 %v1462_v27, %v488_v5  ;;  %v2259_v34 = vpop.f32.mrb[139].mxu0  ;;  %v541_v27 = vadd.f32 %v3618_v51, %v3383_v41 }
 0x43d   :  { %v3619_v34 = vld [vmem:[#allocation6_spill] sm:$0xff] }
 0x43e   :  { %v1580_v18 = vpack.c.bf16 %v1555_v61, %v1554_v19 }
 0x440   :  { %2333 = vmatmul.mubr.bf16.gmra.mrb[136].mxu1 %v1580_v18  ;;  %v544_v18 = vadd.f32 %v3619_v34, %v3383_v41 }
 0x441   :  { %v1467_v9 = vpop.f32.mrb[140].mxu0  ;;  %2336 = vmatprep.mubr.msk.bf16.mxu1 %vm2543_vm1, %v3611_v40 }
 0x442   :  { %v1556_v29 = vmul.f32 %v1467_v9, %v493_v31  ;;  %v2262_v46 = vpop.f32.mrb[141].mxu0 }
 0x443   :  { %v1470_v47 = vpop.f32.mrb[142].mxu0 }
 0x444   :  { %v1557_v52 = vmul.f32 %v1470_v47, %v496_v39  ;;  %v2263_v25 = vpop.f32.mrb[143].mxu0 }
 0x446   :  { %v1581_v14 = vpack.c.bf16 %v1557_v52, %v1556_v29  ;;  %v3620_v52 = vld [vmem:[#allocation7_spill] sm:$0xff] }
 0x447   :  { %v549_v25 = vadd.f32 %v3620_v52, %v3383_v41 }
 0x448   :  { %2337 = vmatmul.mubr.bf16.gmra.mrb[140].mxu1 %v1581_v14 }
 0x449   :  { %v1475_v2 = vpop.f32.mrb[144].mxu0  ;;  %2340 = vmatprep.mubr.msk.bf16.mxu1 %vm2543_vm1, %v3611_v40 }
 0x44a   :  { %v1558_v48 = vmul.f32 %v1475_v2, %v501_v44  ;;  %v2266_v45 = vpop.f32.mrb[145].mxu0  ;;  %v3621_v44 = vld [vmem:[#allocation8_spill] sm:$0xff] }
 0x44b   :  { %v1478_v16 = vpop.f32.mrb[146].mxu0  ;;  %v552_v2 = vadd.f32 %v3621_v44, %v3383_v41 }
 0x44c   :  { %v1559_v20 = vmul.f32 %v1478_v16, %v504_v35  ;;  %v2267_v13 = vpop.f32.mrb[147].mxu0 }
 0x44e   :  { %v1582_v42 = vpack.c.bf16 %v1559_v20, %v1558_v48 }
 0x450   :  { %2341 = vmatmul.mubr.bf16.gmra.mrb[144].mxu1 %v1582_v42  ;;  %v3622_v42 = vld [vmem:[#allocation9_spill] sm:$0xff] }
 0x451   :  { %v1483_v30 = vpop.f32.mrb[148].mxu0  ;;  %2344 = vmatprep.mubr.msk.bf16.mxu1 %vm2543_vm1, %v3611_v40 }
 0x452   :  { %v1560_v26 = vmul.f32 %v1483_v30, %v509_v6  ;;  %v2270_v50 = vpop.f32.mrb[149].mxu0  ;;  %v557_v6 = vadd.f32 %v3622_v42, %v3383_v41 }
 0x453   :  { %v1486_v38 = vpop.f32.mrb[150].mxu0 }
 0x454   :  { %v1561_v10 = vmul.f32 %v1486_v38, %v512_v36  ;;  %v2271_v37 = vpop.f32.mrb[151].mxu0  ;;  %v3623_v36 = vld [vmem:[#allocation10_spill] sm:$0xff] }
 0x456   :  { %v1583_v53 = vpack.c.bf16 %v1561_v10, %v1560_v26  ;;  %v560_v26 = vadd.f32 %v3623_v36, %v3383_v41 }
 0x458   :  { %2345 = vmatmul.mubr.bf16.gmra.mrb[148].mxu1 %v1583_v53 }
 0x459   :  { %v1491_v1 = vpop.f32.mrb[152].mxu0  ;;  %2348 = vmatprep.mubr.msk.bf16.mxu1 %vm2543_vm1, %v3611_v40 }
 0x45a   :  { %v1562_v49 = vmul.f32 %v1491_v1, %v517_v58  ;;  %v2274_v28 = vpop.f32.mrb[153].mxu0  ;;  %v3624_v1 = vld [vmem:[#allocation11_spill] sm:$0xff] }
 0x45b   :  { %v1494_v4 = vpop.f32.mrb[154].mxu0  ;;  %v3625_v28 = vld [vmem:[#allocation12_spill] sm:$0xff] }
 0x45c   :  { %v1563_v22 = vmul.f32 %v1494_v4, %v520_v63  ;;  %v2275_v56 = vpop.f32.mrb[155].mxu0  ;;  %v565_v63 = vadd.f32 %v3624_v1, %v3383_v41  ;;  %v568_v4 = vadd.f32 %v3625_v28, %v3383_v41 }
 0x45e   :  { %v1584_v8 = vpack.c.bf16 %v1563_v22, %v1562_v49 }
 0x460   :  { %2349 = vmatmul.mubr.bf16.gmra.mrb[152].mxu1 %v1584_v8 }
 0x461   :  { %v1499_v59 = vpop.f32.mrb[156].mxu0  ;;  %2352 = vmatprep.mubr.msk.bf16.mxu1 %vm2543_vm1, %v3611_v40 }
 0x462   :  { %v1564_v32 = vmul.f32 %v1499_v59, %v525_v55  ;;  %v2278_v11 = vpop.f32.mrb[157].mxu0 }
 0x463   :  { %v1502_v17 = vpop.f32.mrb[158].mxu0 }
 0x464   :  { %v1565_v0 = vmul.f32 %v1502_v17, %v528_v54  ;;  %v2279_v21 = vpop.f32.mrb[159].mxu0 }
 0x466   :  { %v1585_v62 = vpack.c.bf16 %v1565_v0, %v1564_v32 }
 0x468   :  { %2353 = vmatmul.mubr.bf16.gmra.mrb[156].mxu1 %v1585_v62 }
 0x469   :  { %v1507_v3 = vpop.f32.mrb[160].mxu0  ;;  %2356 = vmatprep.mubr.msk.bf16.mxu1 %vm2543_vm1, %v3611_v40 }
 0x46a   :  { %v1566_v60 = vmul.f32 %v1507_v3, %v533_v24  ;;  %v2282_v7 = vpop.f32.mrb[161].mxu0 }
 0x46b   :  { %v1510_v23 = vpop.f32.mrb[162].mxu0 }
 0x46c   :  { %v1567_v15 = vmul.f32 %v1510_v23, %v536_v43  ;;  %v2283_v5 = vpop.f32.mrb[163].mxu0 }
 0x46e   :  { %v1586_v19 = vpack.c.bf16 %v1567_v15, %v1566_v60 }
 0x470   :  { %2357 = vmatmul.mubr.bf16.gmra.mrb[160].mxu1 %v1586_v19 }
 0x471   :  { %v1515_v61 = vpop.f32.mrb[164].mxu0  ;;  %2360 = vmatprep.mubr.msk.bf16.mxu1 %vm2543_vm1, %v3611_v40 }
 0x472   :  { %v1568_v31 = vmul.f32 %v1515_v61, %v541_v27  ;;  %v2286_v9 = vpop.f32.mrb[165].mxu0 }
 0x473   :  { %v1518_v39 = vpop.f32.mrb[166].mxu0 }
 0x474   :  { %v1569_v29 = vmul.f32 %v1518_v39, %v544_v18  ;;  %v2287_v46 = vpop.f32.mrb[167].mxu0 }
 0x476   :  { %v1587_v47 = vpack.c.bf16 %v1569_v29, %v1568_v31 }
 0x478   :  { %2361 = vmatmul.mubr.bf16.gmra.mrb[164].mxu1 %v1587_v47 }
 0x479   :  { %v1523_v14 = vpop.f32.mrb[168].mxu0  ;;  %2364 = vmatprep.mubr.msk.bf16.mxu1 %vm2543_vm1, %v3611_v40 }
 0x47a   :  { %v1570_v35 = vmul.f32 %v1523_v14, %v549_v25  ;;  %v2290_v48 = vpop.f32.mrb[169].mxu0 }
 0x47b   :  { %v1526_v45 = vpop.f32.mrb[170].mxu0 }
 0x47c   :  { %v1571_v16 = vmul.f32 %v1526_v45, %v552_v2  ;;  %v2291_v20 = vpop.f32.mrb[171].mxu0 }
 0x47e   :  { %v1588_v13 = vpack.c.bf16 %v1571_v16, %v1570_v35 }
 0x480   :  { %2365 = vmatmul.mubr.bf16.gmra.mrb[168].mxu1 %v1588_v13 }
 0x481   :  { %v1531_v30 = vpop.f32.mrb[172].mxu0  ;;  %2368 = vmatprep.mubr.msk.bf16.mxu1 %vm2543_vm1, %v3611_v40 }
 0x482   :  { %v1572_v50 = vmul.f32 %v1531_v30, %v557_v6  ;;  %v2294_v38 = vpop.f32.mrb[173].mxu0 }
 0x483   :  { %v1534_v10 = vpop.f32.mrb[174].mxu0 }
 0x484   :  { %v1573_v37 = vmul.f32 %v1534_v10, %v560_v26  ;;  %v2295_v53 = vpop.f32.mrb[175].mxu0 }
 0x486   :  { %v1589_v58 = vpack.c.bf16 %v1573_v37, %v1572_v50 }
 0x488   :  { %2369 = vmatmul.mubr.bf16.gmra.mrb[172].mxu1 %v1589_v58 }
 0x489   :  { %v1539_v49 = vpop.f32.mrb[176].mxu0  ;;  %2372 = vmatprep.mubr.msk.bf16.mxu1 %vm2543_vm1, %v3611_v40 }
 0x48a   :  { %v1574_v22 = vmul.f32 %v1539_v49, %v565_v63  ;;  %v2298_v56 = vpop.f32.mrb[177].mxu0 }
 0x48b   :  { %v1542_v8 = vpop.f32.mrb[178].mxu0 }
 0x48c   :  { %v1575_v55 = vmul.f32 %v1542_v8, %v568_v4  ;;  %v2299_v59 = vpop.f32.mrb[179].mxu0 }
 0x48e   :  { %v1590_v12 = vpack.c.bf16 %v1575_v55, %v1574_v22 }
 0x490   :  { %2373 = vmatmul.mubr.bf16.gmra.mrb[176].mxu1 %v1590_v12 }
 0x4f3   :  { %v1689_v54 = vpop.f32.mrb[120].mxu1 }
 0x4f4   :  { %1808 = vst.msk [vmem:[%s3600_s7] sm:$0xff] %vm189_vm0, %v1689_v54  ;;  %v2318_v32 = vpop.f32.mrb[121].mxu1 }
 0x4f5   :  { %v1692_v11 = vpop.f32.mrb[122].mxu1 }
 0x4f6   :  { %1809 = vst.msk [vmem:[%s3600_s7 + $0x8] sm:$0xff] %vm189_vm0, %v1692_v11  ;;  %v2319_v40 = vpop.f32.mrb[123].mxu1 }
 0x4fb   :  { %v1697_v41 = vpop.f32.mrb[124].mxu1 }
 0x4fc   :  { %1810 = vst.msk [vmem:[%s3600_s7 + $0x10] sm:$0xff] %vm189_vm0, %v1697_v41  ;;  %v2322_v17 = vpop.f32.mrb[125].mxu1 }
 0x4fd   :  { %v1700_v0 = vpop.f32.mrb[126].mxu1 }
 0x4fe   :  { %1811 = vst.msk [vmem:[%s3600_s7 + $0x18] sm:$0xff] %vm189_vm0, %v1700_v0  ;;  %v2323_v21 = vpop.f32.mrb[127].mxu1 }
 0x503   :  { %v1705_v62 = vpop.f32.mrb[128].mxu1 }
 0x504   :  { %1812 = vst.msk [vmem:[%s3600_s7 + $0x20] sm:$0xff] %vm189_vm0, %v1705_v62  ;;  %v2326_v57 = vpop.f32.mrb[129].mxu1 }
 0x505   :  { %v1708_v24 = vpop.f32.mrb[130].mxu1 }
 0x506   :  { %1813 = vst.msk [vmem:[%s3600_s7 + $0x28] sm:$0xff] %vm189_vm0, %v1708_v24  ;;  %v2327_v3 = vpop.f32.mrb[131].mxu1 }
 0x50b   :  { %v1713_v33 = vpop.f32.mrb[132].mxu1 }
 0x50c   :  { %1814 = vst.msk [vmem:[%s3600_s7 + $0x30] sm:$0xff] %vm189_vm0, %v1713_v33  ;;  %v2330_v43 = vpop.f32.mrb[133].mxu1 }
 0x50d   :  { %v1716_v60 = vpop.f32.mrb[134].mxu1 }
 0x50e   :  { %1815 = vst.msk [vmem:[%s3600_s7 + $0x38] sm:$0xff] %vm189_vm0, %v1716_v60  ;;  %v2331_v7 = vpop.f32.mrb[135].mxu1 }
 0x513   :  { %v1721_v23 = vpop.f32.mrb[136].mxu1 }
 0x514   :  { %1816 = vst.msk [vmem:[%s3600_s7 + $0x40] sm:$0xff] %vm189_vm0, %v1721_v23  ;;  %v2334_v15 = vpop.f32.mrb[137].mxu1 }
 0x515   :  { %v1724_v5 = vpop.f32.mrb[138].mxu1 }
 0x516   :  { %1817 = vst.msk [vmem:[%s3600_s7 + $0x48] sm:$0xff] %vm189_vm0, %v1724_v5  ;;  %v2335_v19 = vpop.f32.mrb[139].mxu1 }
 0x51b   :  { %v1729_v51 = vpop.f32.mrb[140].mxu1 }
 0x51c   :  { %1818 = vst.msk [vmem:[%s3600_s7 + $0x50] sm:$0xff] %vm189_vm0, %v1729_v51  ;;  %v2338_v27 = vpop.f32.mrb[141].mxu1 }
 0x51d   :  { %v1732_v61 = vpop.f32.mrb[142].mxu1 }
 0x51e   :  { %1819 = vst.msk [vmem:[%s3600_s7 + $0x58] sm:$0xff] %vm189_vm0, %v1732_v61  ;;  %v2339_v34 = vpop.f32.mrb[143].mxu1 }
 0x523   :  { %v1737_v18 = vpop.f32.mrb[144].mxu1 }
 0x524   :  { %1820 = vst.msk [vmem:[%s3600_s7 + $0x60] sm:$0xff] %vm189_vm0, %v1737_v18  ;;  %v2342_v31 = vpop.f32.mrb[145].mxu1 }
 0x525   :  { %v1740_v9 = vpop.f32.mrb[146].mxu1 }
 0x526   :  { %1821 = vst.msk [vmem:[%s3600_s7 + $0x68] sm:$0xff] %vm189_vm0, %v1740_v9  ;;  %v2343_v39 = vpop.f32.mrb[147].mxu1 }
 0x52b   :  { %v1745_v29 = vpop.f32.mrb[148].mxu1 }
 0x52c   :  { %1822 = vst.msk [vmem:[%s3600_s7 + $0x70] sm:$0xff] %vm189_vm0, %v1745_v29  ;;  %v2346_v46 = vpop.f32.mrb[149].mxu1 }
 0x52d   :  { %v1748_v47 = vpop.f32.mrb[150].mxu1 }
 0x52e   :  { %1823 = vst.msk [vmem:[%s3600_s7 + $0x78] sm:$0xff] %vm189_vm0, %v1748_v47  ;;  %v2347_v52 = vpop.f32.mrb[151].mxu1 }
 0x533   :  { %v1753_v25 = vpop.f32.mrb[152].mxu1 }
 0x534   :  { %1824 = vst.msk [vmem:[%s3600_s7 + $0x80] sm:$0xff] %vm189_vm0, %v1753_v25  ;;  %v2350_v14 = vpop.f32.mrb[153].mxu1 }
 0x535   :  { %v1756_v44 = vpop.f32.mrb[154].mxu1 }
 0x536   :  { %1825 = vst.msk [vmem:[%s3600_s7 + $0x88] sm:$0xff] %vm189_vm0, %v1756_v44  ;;  %v2351_v2 = vpop.f32.mrb[155].mxu1 }
 0x53b   :  { %v1761_v35 = vpop.f32.mrb[156].mxu1 }
 0x53c   :  { %1826 = vst.msk [vmem:[%s3600_s7 + $0x90] sm:$0xff] %vm189_vm0, %v1761_v35  ;;  %v2354_v48 = vpop.f32.mrb[157].mxu1 }
 0x53d   :  { %v1764_v45 = vpop.f32.mrb[158].mxu1 }
 0x53e   :  { %1827 = vst.msk [vmem:[%s3600_s7 + $0x98] sm:$0xff] %vm189_vm0, %v1764_v45  ;;  %v2355_v16 = vpop.f32.mrb[159].mxu1 }
 0x543   :  { %v1769_v20 = vpop.f32.mrb[160].mxu1 }
 0x544   :  { %1828 = vst.msk [vmem:[%s3600_s7 + $0xa0] sm:$0xff] %vm189_vm0, %v1769_v20  ;;  %v2358_v13 = vpop.f32.mrb[161].mxu1 }
 0x545   :  { %v1772_v42 = vpop.f32.mrb[162].mxu1 }
 0x546   :  { %1829 = vst.msk [vmem:[%s3600_s7 + $0xa8] sm:$0xff] %vm189_vm0, %v1772_v42  ;;  %v2359_v6 = vpop.f32.mrb[163].mxu1 }
 0x54b   :  { %v1777_v30 = vpop.f32.mrb[164].mxu1 }
 0x54c   :  { %1830 = vst.msk [vmem:[%s3600_s7 + $0xb0] sm:$0xff] %vm189_vm0, %v1777_v30  ;;  %v2362_v36 = vpop.f32.mrb[165].mxu1 }
 0x54d   :  { %v1780_v26 = vpop.f32.mrb[166].mxu1 }
 0x54e   :  { %1831 = vst.msk [vmem:[%s3600_s7 + $0xb8] sm:$0xff] %vm189_vm0, %v1780_v26  ;;  %v2363_v50 = vpop.f32.mrb[167].mxu1 }
 0x553   :  { %v1785_v38 = vpop.f32.mrb[168].mxu1 }
 0x554   :  { %1832 = vst.msk [vmem:[%s3600_s7 + $0xc0] sm:$0xff] %vm189_vm0, %v1785_v38  ;;  %v2366_v10 = vpop.f32.mrb[169].mxu1 }
 0x555   :  { %v1788_v37 = vpop.f32.mrb[170].mxu1 }
 0x556   :  { %1833 = vst.msk [vmem:[%s3600_s7 + $0xc8] sm:$0xff] %vm189_vm0, %v1788_v37  ;;  %v2367_v53 = vpop.f32.mrb[171].mxu1 }
 0x55b   :  { %v1793_v58 = vpop.f32.mrb[172].mxu1 }
 0x55c   :  { %1834 = vst.msk [vmem:[%s3600_s7 + $0xd0] sm:$0xff] %vm189_vm0, %v1793_v58  ;;  %v2370_v1 = vpop.f32.mrb[173].mxu1 }
 0x55d   :  { %v1796_v63 = vpop.f32.mrb[174].mxu1 }
 0x55e   :  { %1835 = vst.msk [vmem:[%s3600_s7 + $0xd8] sm:$0xff] %vm189_vm0, %v1796_v63  ;;  %v2371_v49 = vpop.f32.mrb[175].mxu1 }
 0x563   :  { %v1801_v28 = vpop.f32.mrb[176].mxu1 }
 0x564   :  { %1836 = vst.msk [vmem:[%s3600_s7 + $0xe0] sm:$0xff] %vm189_vm0, %v1801_v28  ;;  %v2374_v4 = vpop.f32.mrb[177].mxu1 }
 0x565   :  { %v1804_v22 = vpop.f32.mrb[178].mxu1 }
 0x566   :  { %1837 = vst.msk [vmem:[%s3600_s7 + $0xe8] sm:$0xff] %vm189_vm0, %v1804_v22  ;;  %v2375_v56 = vpop.f32.mrb[179].mxu1 }

</bundles_post_ra>
